<compile_context>
chip_gen: v7x
topology: tpu7x:2x2x1
jax: 0.10.0
libtpu: 0.0.40
codegen_flags: <defaults>
</compile_context>

<pallas_src>
import functools

import jax
import jax.numpy as jnp
from jax.experimental import pallas as pl
from jax.experimental.pallas import tpu as pltpu

# ---- small, deterministic config (mirrors module __init__ shapes) ----
N_ITEMS = 100            # config['n_items']  -> embedding table rows = n_items + 1
HIDDEN = 32              # config['hidden_units'] == embedding_dim == output_size
NUM_LAYERS = 2           # config['num_blocks']
BATCH = 4
SEQ = 8


def _sigmoid(v):
    # Single-EUP sigmoid: one tanh push instead of exp + divide on the serial
    # latency-bound critical path. Exactly equal to sigmoid(v) in real math.
    return 0.5 * jnp.tanh(0.5 * v) + 0.5


def gru4rec_kernel(x_ref, keep_ref, w_ref, b_ref, head_ref, out_ref, gi0_ref,
                   *, seq_len, batch):
    """Single invocation: full multi-layer GRU recurrence + tanh(h2o) head.

    x_ref   : (S*B, E)       time-major flattened embeddings (B padded to 8)
    keep_ref: (S*B, 1)       0/1 float mask, applied to the hidden AFTER output
    w_ref   : (L, E+H, 3H)   [:, :E] = W_ih^T, [:, E:] = W_hh^T, gates r|z|n
    b_ref   : (L, 2, 1, 3H)  [l, 0] = b_ih, [l, 1] = b_hh
    head_ref: (H+1, H)       [:H] = h2o weight^T (in,out), [H:] = h2o bias
    out_ref : (S*B, H)       tanh(h2o(top_layer_output)) per timestep
    gi0_ref : (S*B, 3H)      scratch for the hoisted layer-0 ih products
    """
    L, EH, H3 = w_ref.shape
    H = H3 // 3
    E = EH - H
    S, B = seq_len, batch

    # Hoist weight/bias loads out of the unrolled loop (one vld each).
    wih = [w_ref[l, :E, :] for l in range(L)]      # (E, 3H)
    whh = [w_ref[l, E:, :] for l in range(L)]      # (H, 3H)
    bih = [b_ref[l, 0] for l in range(L)]          # (1, 3H)
    bhh = [b_ref[l, 1] for l in range(L)]          # (1, 3H)

    # Layer-0 input->hidden products do not depend on the recurrence: compute
    # them as ONE batched (S*B, E) x (E, 3H) matmul up front and park the
    # result in VMEM scratch (keeps it off the unrolled loop's live-vreg set).
    gi0_ref[...] = (jnp.dot(x_ref[...], wih[0],
                            preferred_element_type=jnp.float32) + bih[0])

    # Hidden state lives in values/vregs (tiny: L x (B, H)).
    h = [jnp.zeros((B, H), jnp.float32) for _ in range(L)]

    def gru_gates(gi, gh, h_prev):
        r = _sigmoid(gi[:, :H] + gh[:, :H])
        z = _sigmoid(gi[:, H:2 * H] + gh[:, H:2 * H])
        n = jnp.tanh(gi[:, 2 * H:] + r * gh[:, 2 * H:])
        return (1.0 - z) * n + z * h_prev

    # Fully unrolled recurrence (S and L are small compile-time constants).
    for t in range(S):
        row = t * B                                            # static offset

        # ---- layer 0: only the fused (B,H)x(H,3H) hh matmul is on the chain
        gi = gi0_ref[row:row + B, :]
        gh = jnp.dot(h[0], whh[0], preferred_element_type=jnp.float32) + bhh[0]
        x = gru_gates(gi, gh, h[0])
        h[0] = x

        # ---- layers 1..L-1: two fused (.,3H) matmuls per layer-step ----
        for l in range(1, L):
            gi = jnp.dot(x, wih[l], preferred_element_type=jnp.float32) + bih[l]
            gh = jnp.dot(h[l], whh[l], preferred_element_type=jnp.float32) + bhh[l]
            x = gru_gates(gi, gh, h[l])
            h[l] = x
            # TODO(synk): nn.GRU inter-layer dropout is train-only; inference omits it.

        # Record the top-layer output (pre-mask, as in torch) straight into the
        # output block -- it doubles as the "tops" buffer for the batched head.
        out_ref[row:row + B, :] = x

        # hidden *= (mask != 0)  AFTER the output is recorded (as in torch)
        keep = keep_ref[row:row + B, :]                        # (B, 1), lane-broadcast
        for l in range(L):
            h[l] = h[l] * keep

    # Batched output head: one (S*B, H) x (H, H) matmul + tanh, single store.
    top = out_ref[...]
    out_ref[...] = jnp.tanh(
        jnp.dot(top, head_ref[:H, :], preferred_element_type=jnp.float32)
        + head_ref[H:H + 1, :])


def gru4rec_core(x_flat, keep_flat, w_all, b_all, head, *, seq_len, batch):
    SB, _ = x_flat.shape
    H = head.shape[1]
    H3 = w_all.shape[-1]
    vmem = pl.BlockSpec(memory_space=pltpu.MemorySpace.VMEM)   # full-array VMEM block
    kernel = functools.partial(gru4rec_kernel, seq_len=seq_len, batch=batch)
    # TODO(synk): for large batches, add a leading "parallel" batch-tile grid
    # axis (keep time inside the kernel) so v7x's two TensorCores each take
    # half the batch; size that tile for v7x's 64 MiB VMEM (32 MiB scoped).
    return pl.pallas_call(
        kernel,
        out_shape=jax.ShapeDtypeStruct((SB, H), jnp.float32),
        in_specs=[vmem] * 5,
        out_specs=vmem,
        scratch_shapes=[pltpu.VMEM((SB, H3), jnp.float32)],
    )(x_flat, keep_flat, w_all, b_all, head)


def init_params(key, n_items=N_ITEMS, hidden=HIDDEN, num_layers=NUM_LAYERS):
    E = H = hidden
    ks = jax.random.split(key, 7)
    scale = 0.1
    return {
        "look_up": jax.random.normal(ks[0], (n_items + 1, E), jnp.float32) * scale,
        # PyTorch GRU weights are (3H, in)/(3H, H); stored pre-transposed (in, 3H),
        # gate order r|z|n along the 3H axis.
        "wih": jax.random.normal(ks[1], (num_layers, E, 3 * H), jnp.float32) * scale,
        "whh": jax.random.normal(ks[2], (num_layers, H, 3 * H), jnp.float32) * scale,
        "bih": jax.random.normal(ks[3], (num_layers, 3 * H), jnp.float32) * scale,
        "bhh": jax.random.normal(ks[4], (num_layers, 3 * H), jnp.float32) * scale,
        # nn.Linear(H, H): weight (out, in) -> stored transposed (in, out)
        "h2o_w_t": jax.random.normal(ks[5], (H, H), jnp.float32) * scale,
        "h2o_b": jax.random.normal(ks[6], (1, H), jnp.float32) * scale,
    }


def prepare_kernel_weights(params):
    """Pack the GRU + head parameters into three kernel inputs (fewer DMAs)."""
    wih, whh = params["wih"], params["whh"]        # (L, E, 3H), (L, H, 3H)
    bih, bhh = params["bih"], params["bhh"]        # (L, 3H)
    w_all = jnp.concatenate([wih, whh], axis=1)                 # (L, E+H, 3H)
    b_all = jnp.stack([bih, bhh], axis=1)[:, :, None, :]        # (L, 2, 1, 3H)
    head = jnp.concatenate([params["h2o_w_t"], params["h2o_b"]], axis=0)  # (H+1, H)
    return w_all, b_all, head


def basic_gru4rec_forward(params, interaction_list, interaction_mask, neg_list):
    emb = params["look_up"]
    # The gather is needed in XLA anyway because input_embs_all is returned.
    # TODO(synk): could also fuse the gather in-kernel via scalar prefetch, but
    # the embeddings are required as plain outputs, so it would be duplicate work.
    input_embs_all = jnp.take(emb, interaction_list, axis=0)        # (B, S, E)
    target_pos_embs = input_embs_all[:, 1:, :]
    # TODO(synk): original module references undefined self.item_emb; reuse look_up table.
    target_neg_embs = jnp.take(emb, neg_list, axis=0)[:, :-1, :]

    B, S, E = input_embs_all.shape
    H = params["whh"].shape[1]

    # time-major, batch padded up to the sublane tile (multiple of 8)
    B_pad = max(8, ((B + 7) // 8) * 8)
    x_tm = jnp.transpose(input_embs_all, (1, 0, 2))                 # (S, B, E)
    keep_tm = jnp.transpose((interaction_mask != 0.0).astype(jnp.float32))   # (S, B)
    if B_pad != B:
        x_tm = jnp.pad(x_tm, ((0, 0), (0, B_pad - B), (0, 0)))
        keep_tm = jnp.pad(keep_tm, ((0, 0), (0, B_pad - B)))
    x_flat = x_tm.reshape(S * B_pad, E)
    keep_flat = keep_tm.reshape(S * B_pad, 1)

    w_all, b_all, head = prepare_kernel_weights(params)

    out_flat = gru4rec_core(x_flat, keep_flat, w_all, b_all, head,
                            seq_len=S, batch=B_pad)                 # (S*B_pad, H)
    final_output = jnp.transpose(
        out_flat.reshape(S, B_pad, H)[:, :B, :], (1, 0, 2))         # (B, S, H)

    return (final_output[:, :-1, :],
            target_pos_embs,
            target_neg_embs,
            jnp.concatenate((input_embs_all, final_output), axis=2))


def _ref_core(x_tm, mask_tm, wih, whh, bih, bhh, wo_t, bo):
    """Pure-JAX reference (PyTorch nn.GRU semantics, gate order r|z|n, stacked weights)."""
    S, B, _ = x_tm.shape
    L = wih.shape[0]
    H = whh.shape[1]
    h = jnp.zeros((L, B, H), jnp.float32)
    outs = []
    for t in range(S):
        x = x_tm[t]
        new_h = []
        for l in range(L):
            hp = h[l]
            gi = x @ wih[l] + bih[l]
            gh = hp @ whh[l] + bhh[l]
            r = jax.nn.sigmoid(gi[:, :H] + gh[:, :H])
            z = jax.nn.sigmoid(gi[:, H:2 * H] + gh[:, H:2 * H])
            n = jnp.tanh(gi[:, 2 * H:] + r * gh[:, 2 * H:])
            hn = (1.0 - z) * n + z * hp
            new_h.append(hn)
            x = hn
        h = jnp.stack(new_h)
        outs.append(jnp.tanh(x @ wo_t + bo))
        keep = (mask_tm[t] != 0.0).astype(jnp.float32)
        h = h * keep[None, :, None]
    return jnp.stack(outs)


if __name__ == "__main__":
    key = jax.random.PRNGKey(0)
    kp, ki, km, kn = jax.random.split(key, 4)

    params = init_params(kp)

    interaction_list = jax.random.randint(ki, (BATCH, SEQ), 1, N_ITEMS + 1, jnp.int32)
    interaction_mask = (jax.random.uniform(km, (BATCH, SEQ)) > 0.25).astype(jnp.float32)
    neg_list = jax.random.randint(kn, (BATCH, SEQ), 1, N_ITEMS + 1, jnp.int32)

    fwd = jax.jit(basic_gru4rec_forward)
    outs = jax.block_until_ready(fwd(params, interaction_list, interaction_mask, neg_list))

    # correctness check of the Pallas recurrence vs pure-JAX reference
    x_tm = jnp.transpose(jnp.take(params["look_up"], interaction_list, axis=0), (1, 0, 2))
    mask_tm = jnp.transpose(interaction_mask)
    ref_tm = _ref_core(x_tm, mask_tm, params["wih"], params["whh"],
                       params["bih"], params["bhh"],
                       params["h2o_w_t"], params["h2o_b"])
    ref_final = jnp.transpose(ref_tm, (1, 0, 2))[:, :-1, :]
    assert jnp.allclose(outs[0], ref_final, atol=5e-5, rtol=5e-5), "Pallas output mismatch"

    print("KERNEL_OK")
</pallas_src>

<mosaic_0001>
module attributes {stable_mosaic.version = 11 : i64} {
  func.func @gru4rec_kernel(%arg0: memref<64x32xf32, #tpu.memory_space<vmem>>, %arg1: memref<64x1xf32, #tpu.memory_space<vmem>>, %arg2: memref<2x64x96xf32, #tpu.memory_space<vmem>>, %arg3: memref<2x2x1x96xf32, #tpu.memory_space<vmem>>, %arg4: memref<33x32xf32, #tpu.memory_space<vmem>>, %arg5: memref<64x32xf32, #tpu.memory_space<vmem>>, %arg6: memref<64x96xf32, #tpu.memory_space<vmem>>) attributes {dimension_semantics = [], scalar_prefetch = 0 : i64, scratch_operands = 1 : i64, tpu.core_type = #tpu.core_type<tc>} {
    %c0 = arith.constant 0 : index
    %c0_0 = arith.constant 0 : index
    %c0_1 = arith.constant 0 : index
    %0 = vector.load %arg2[%c0, %c0_0, %c0_1] : memref<2x64x96xf32, #tpu.memory_space<vmem>>, vector<1x32x96xf32>
    %1 = vector.shape_cast %0 : vector<1x32x96xf32> to vector<32x96xf32>
    %c1 = arith.constant 1 : index
    %c0_2 = arith.constant 0 : index
    %c0_3 = arith.constant 0 : index
    %2 = vector.load %arg2[%c1, %c0_2, %c0_3] : memref<2x64x96xf32, #tpu.memory_space<vmem>>, vector<1x32x96xf32>
    %3 = vector.shape_cast %2 : vector<1x32x96xf32> to vector<32x96xf32>
    %c0_4 = arith.constant 0 : index
    %c32 = arith.constant 32 : index
    %c0_5 = arith.constant 0 : index
    %4 = vector.load %arg2[%c0_4, %c32, %c0_5] : memref<2x64x96xf32, #tpu.memory_space<vmem>>, vector<1x32x96xf32>
    %5 = vector.shape_cast %4 : vector<1x32x96xf32> to vector<32x96xf32>
    %c1_6 = arith.constant 1 : index
    %c32_7 = arith.constant 32 : index
    %c0_8 = arith.constant 0 : index
    %6 = vector.load %arg2[%c1_6, %c32_7, %c0_8] : memref<2x64x96xf32, #tpu.memory_space<vmem>>, vector<1x32x96xf32>
    %7 = vector.shape_cast %6 : vector<1x32x96xf32> to vector<32x96xf32>
    %c0_9 = arith.constant 0 : index
    %c0_10 = arith.constant 0 : index
    %c0_11 = arith.constant 0 : index
    %c0_12 = arith.constant 0 : index
    %8 = vector.load %arg3[%c0_9, %c0_10, %c0_11, %c0_12] : memref<2x2x1x96xf32, #tpu.memory_space<vmem>>, vector<1x1x1x96xf32>
    %9 = vector.shape_cast %8 : vector<1x1x1x96xf32> to vector<1x96xf32>
    %c1_13 = arith.constant 1 : index
    %c0_14 = arith.constant 0 : index
    %c0_15 = arith.constant 0 : index
    %c0_16 = arith.constant 0 : index
    %10 = vector.load %arg3[%c1_13, %c0_14, %c0_15, %c0_16] : memref<2x2x1x96xf32, #tpu.memory_space<vmem>>, vector<1x1x1x96xf32>
    %11 = vector.shape_cast %10 : vector<1x1x1x96xf32> to vector<1x96xf32>
    %c0_17 = arith.constant 0 : index
    %c1_18 = arith.constant 1 : index
    %c0_19 = arith.constant 0 : index
    %c0_20 = arith.constant 0 : index
    %12 = vector.load %arg3[%c0_17, %c1_18, %c0_19, %c0_20] : memref<2x2x1x96xf32, #tpu.memory_space<vmem>>, vector<1x1x1x96xf32>
    %13 = vector.shape_cast %12 : vector<1x1x1x96xf32> to vector<1x96xf32>
    %c1_21 = arith.constant 1 : index
    %c1_22 = arith.constant 1 : index
    %c0_23 = arith.constant 0 : index
    %c0_24 = arith.constant 0 : index
    %14 = vector.load %arg3[%c1_21, %c1_22, %c0_23, %c0_24] : memref<2x2x1x96xf32, #tpu.memory_space<vmem>>, vector<1x1x1x96xf32>
    %15 = vector.shape_cast %14 : vector<1x1x1x96xf32> to vector<1x96xf32>
    %c0_25 = arith.constant 0 : index
    %c0_26 = arith.constant 0 : index
    %16 = vector.load %arg0[%c0_25, %c0_26] : memref<64x32xf32, #tpu.memory_space<vmem>>, vector<64x32xf32>
    %cst = arith.constant dense<0.000000e+00> : vector<64x96xf32>
    %17 = tpu.matmul %16, %1, %cst {dimension_numbers = #tpu.dot_dimension_numbers<[1], [0], [0], [1], [0, 0, 1, 1], [], []>} : vector<64x32xf32>, vector<32x96xf32>, vector<64x96xf32> -> vector<64x96xf32>
    %18 = vector.broadcast %9 : vector<1x96xf32> to vector<64x96xf32>
    %19 = arith.addf %17, %18 : vector<64x96xf32>
    %c0_27 = arith.constant 0 : index
    %c0_28 = arith.constant 0 : index
    %20 = vector.load %arg6[%c0_27, %c0_28] : memref<64x96xf32, #tpu.memory_space<vmem>>, vector<64x96xf32>
    tpu.vector_store %arg6[%c0_27, %c0_28], %19 {strides = array<i32>} : memref<64x96xf32, #tpu.memory_space<vmem>>, vector<64x96xf32>,
    %cst_29 = arith.constant 0.000000e+00 : f32
    %21 = vector.broadcast %cst_29 : f32 to vector<8x32xf32>
    %cst_30 = arith.constant 0.000000e+00 : f32
    %22 = vector.broadcast %cst_30 : f32 to vector<8x32xf32>
    %c0_31 = arith.constant 0 : index
    %c0_32 = arith.constant 0 : index
    %23 = vector.load %arg6[%c0_31, %c0_32] : memref<64x96xf32, #tpu.memory_space<vmem>>, vector<8x96xf32>
    %cst_33 = arith.constant dense<0.000000e+00> : vector<8x96xf32>
    %24 = tpu.matmul %21, %5, %cst_33 {dimension_numbers = #tpu.dot_dimension_numbers<[1], [0], [0], [1], [0, 0, 1, 1], [], []>} : vector<8x32xf32>, vector<32x96xf32>, vector<8x96xf32> -> vector<8x96xf32>
    %25 = vector.broadcast %13 : vector<1x96xf32> to vector<8x96xf32>
    %26 = arith.addf %24, %25 : vector<8x96xf32>
    %27 = vector.extract_strided_slice %23 {offsets = [0, 0], sizes = [8, 32], strides = [1, 1]} : vector<8x96xf32> to vector<8x32xf32>
    %28 = vector.extract_strided_slice %26 {offsets = [0, 0], sizes = [8, 32], strides = [1, 1]} : vector<8x96xf32> to vector<8x32xf32>
    %29 = arith.addf %27, %28 : vector<8x32xf32>
    %cst_34 = arith.constant 5.000000e-01 : f32
    %30 = vector.broadcast %cst_34 : f32 to vector<8x32xf32>
    %31 = arith.mulf %30, %29 : vector<8x32xf32>
    %32 = math.tanh %31 : vector<8x32xf32>
    %cst_35 = arith.constant 5.000000e-01 : f32
    %33 = vector.broadcast %cst_35 : f32 to vector<8x32xf32>
    %34 = arith.mulf %33, %32 : vector<8x32xf32>
    %cst_36 = arith.constant 5.000000e-01 : f32
    %35 = vector.broadcast %cst_36 : f32 to vector<8x32xf32>
    %36 = arith.addf %34, %35 : vector<8x32xf32>
    %37 = vector.extract_strided_slice %23 {offsets = [0, 32], sizes = [8, 32], strides = [1, 1]} : vector<8x96xf32> to vector<8x32xf32>
    %38 = vector.extract_strided_slice %26 {offsets = [0, 32], sizes = [8, 32], strides = [1, 1]} : vector<8x96xf32> to vector<8x32xf32>
    %39 = arith.addf %37, %38 : vector<8x32xf32>
    %cst_37 = arith.constant 5.000000e-01 : f32
    %40 = vector.broadcast %cst_37 : f32 to vector<8x32xf32>
    %41 = arith.mulf %40, %39 : vector<8x32xf32>
    %42 = math.tanh %41 : vector<8x32xf32>
    %cst_38 = arith.constant 5.000000e-01 : f32
    %43 = vector.broadcast %cst_38 : f32 to vector<8x32xf32>
    %44 = arith.mulf %43, %42 : vector<8x32xf32>
    %cst_39 = arith.constant 5.000000e-01 : f32
    %45 = vector.broadcast %cst_39 : f32 to vector<8x32xf32>
    %46 = arith.addf %44, %45 : vector<8x32xf32>
    %47 = vector.extract_strided_slice %23 {offsets = [0, 64], sizes = [8, 32], strides = [1, 1]} : vector<8x96xf32> to vector<8x32xf32>
    %48 = vector.extract_strided_slice %26 {offsets = [0, 64], sizes = [8, 32], strides = [1, 1]} : vector<8x96xf32> to vector<8x32xf32>
    %49 = arith.mulf %36, %48 : vector<8x32xf32>
    %50 = arith.addf %47, %49 : vector<8x32xf32>
    %51 = math.tanh %50 : vector<8x32xf32>
    %cst_40 = arith.constant 1.000000e+00 : f32
    %52 = vector.broadcast %cst_40 : f32 to vector<8x32xf32>
    %53 = arith.subf %52, %46 : vector<8x32xf32>
    %54 = arith.mulf %53, %51 : vector<8x32xf32>
    %55 = arith.mulf %46, %21 : vector<8x32xf32>
    %56 = arith.addf %54, %55 : vector<8x32xf32>
    %cst_41 = arith.constant dense<0.000000e+00> : vector<8x96xf32>
    %57 = tpu.matmul %56, %3, %cst_41 {dimension_numbers = #tpu.dot_dimension_numbers<[1], [0], [0], [1], [0, 0, 1, 1], [], []>} : vector<8x32xf32>, vector<32x96xf32>, vector<8x96xf32> -> vector<8x96xf32>
    %58 = vector.broadcast %11 : vector<1x96xf32> to vector<8x96xf32>
    %59 = arith.addf %57, %58 : vector<8x96xf32>
    %cst_42 = arith.constant dense<0.000000e+00> : vector<8x96xf32>
    %60 = tpu.matmul %22, %7, %cst_42 {dimension_numbers = #tpu.dot_dimension_numbers<[1], [0], [0], [1], [0, 0, 1, 1], [], []>} : vector<8x32xf32>, vector<32x96xf32>, vector<8x96xf32> -> vector<8x96xf32>
    %61 = vector.broadcast %15 : vector<1x96xf32> to vector<8x96xf32>
    %62 = arith.addf %60, %61 : vector<8x96xf32>
    %63 = vector.extract_strided_slice %59 {offsets = [0, 0], sizes = [8, 32], strides = [1, 1]} : vector<8x96xf32> to vector<8x32xf32>
    %64 = vector.extract_strided_slice %62 {offsets = [0, 0], sizes = [8, 32], strides = [1, 1]} : vector<8x96xf32> to vector<8x32xf32>
    %65 = arith.addf %63, %64 : vector<8x32xf32>
    %cst_43 = arith.constant 5.000000e-01 : f32
    %66 = vector.broadcast %cst_43 : f32 to vector<8x32xf32>
    %67 = arith.mulf %66, %65 : vector<8x32xf32>
    %68 = math.tanh %67 : vector<8x32xf32>
    %cst_44 = arith.constant 5.000000e-01 : f32
    %69 = vector.broadcast %cst_44 : f32 to vector<8x32xf32>
    %70 = arith.mulf %69, %68 : vector<8x32xf32>
    %cst_45 = arith.constant 5.000000e-01 : f32
    %71 = vector.broadcast %cst_45 : f32 to vector<8x32xf32>
    %72 = arith.addf %70, %71 : vector<8x32xf32>
    %73 = vector.extract_strided_slice %59 {offsets = [0, 32], sizes = [8, 32], strides = [1, 1]} : vector<8x96xf32> to vector<8x32xf32>
    %74 = vector.extract_strided_slice %62 {offsets = [0, 32], sizes = [8, 32], strides = [1, 1]} : vector<8x96xf32> to vector<8x32xf32>
    %75 = arith.addf %73, %74 : vector<8x32xf32>
    %cst_46 = arith.constant 5.000000e-01 : f32
    %76 = vector.broadcast %cst_46 : f32 to vector<8x32xf32>
    %77 = arith.mulf %76, %75 : vector<8x32xf32>
    %78 = math.tanh %77 : vector<8x32xf32>
    %cst_47 = arith.constant 5.000000e-01 : f32
    %79 = vector.broadcast %cst_47 : f32 to vector<8x32xf32>
    %80 = arith.mulf %79, %78 : vector<8x32xf32>
    %cst_48 = arith.constant 5.000000e-01 : f32
    %81 = vector.broadcast %cst_48 : f32 to vector<8x32xf32>
    %82 = arith.addf %80, %81 : vector<8x32xf32>
    %83 = vector.extract_strided_slice %59 {offsets = [0, 64], sizes = [8, 32], strides = [1, 1]} : vector<8x96xf32> to vector<8x32xf32>
    %84 = vector.extract_strided_slice %62 {offsets = [0, 64], sizes = [8, 32], strides = [1, 1]} : vector<8x96xf32> to vector<8x32xf32>
    %85 = arith.mulf %72, %84 : vector<8x32xf32>
    %86 = arith.addf %83, %85 : vector<8x32xf32>
    %87 = math.tanh %86 : vector<8x32xf32>
    %cst_49 = arith.constant 1.000000e+00 : f32
    %88 = vector.broadcast %cst_49 : f32 to vector<8x32xf32>
    %89 = arith.subf %88, %82 : vector<8x32xf32>
    %90 = arith.mulf %89, %87 : vector<8x32xf32>
    %91 = arith.mulf %82, %22 : vector<8x32xf32>
    %92 = arith.addf %90, %91 : vector<8x32xf32>
    %c0_50 = arith.constant 0 : index
    %c0_51 = arith.constant 0 : index
    %93 = vector.load %arg5[%c0_50, %c0_51] : memref<64x32xf32, #tpu.memory_space<vmem>>, vector<8x32xf32>
    tpu.vector_store %arg5[%c0_50, %c0_51], %92 {strides = array<i32>} : memref<64x32xf32, #tpu.memory_space<vmem>>, vector<8x32xf32>,
    %c0_52 = arith.constant 0 : index
    %c0_53 = arith.constant 0 : index
    %94 = vector.load %arg1[%c0_52, %c0_53] : memref<64x1xf32, #tpu.memory_space<vmem>>, vector<8x1xf32>
    %95 = vector.broadcast %94 : vector<8x1xf32> to vector<8x32xf32>
    %96 = arith.mulf %56, %95 : vector<8x32xf32>
    %97 = vector.broadcast %94 : vector<8x1xf32> to vector<8x32xf32>
    %98 = arith.mulf %92, %97 : vector<8x32xf32>
    %c8 = arith.constant 8 : index
    %c0_54 = arith.constant 0 : index
    %99 = vector.load %arg6[%c8, %c0_54] : memref<64x96xf32, #tpu.memory_space<vmem>>, vector<8x96xf32>
    %cst_55 = arith.constant dense<0.000000e+00> : vector<8x96xf32>
    %100 = tpu.matmul %96, %5, %cst_55 {dimension_numbers = #tpu.dot_dimension_numbers<[1], [0], [0], [1], [0, 0, 1, 1], [], []>} : vector<8x32xf32>, vector<32x96xf32>, vector<8x96xf32> -> vector<8x96xf32>
    %101 = vector.broadcast %13 : vector<1x96xf32> to vector<8x96xf32>
    %102 = arith.addf %100, %101 : vector<8x96xf32>
    %103 = vector.extract_strided_slice %99 {offsets = [0, 0], sizes = [8, 32], strides = [1, 1]} : vector<8x96xf32> to vector<8x32xf32>
    %104 = vector.extract_strided_slice %102 {offsets = [0, 0], sizes = [8, 32], strides = [1, 1]} : vector<8x96xf32> to vector<8x32xf32>
    %105 = arith.addf %103, %104 : vector<8x32xf32>
    %cst_56 = arith.constant 5.000000e-01 : f32
    %106 = vector.broadcast %cst_56 : f32 to vector<8x32xf32>
    %107 = arith.mulf %106, %105 : vector<8x32xf32>
    %108 = math.tanh %107 : vector<8x32xf32>
    %cst_57 = arith.constant 5.000000e-01 : f32
    %109 = vector.broadcast %cst_57 : f32 to vector<8x32xf32>
    %110 = arith.mulf %109, %108 : vector<8x32xf32>
    %cst_58 = arith.constant 5.000000e-01 : f32
    %111 = vector.broadcast %cst_58 : f32 to vector<8x32xf32>
    %112 = arith.addf %110, %111 : vector<8x32xf32>
    %113 = vector.extract_strided_slice %99 {offsets = [0, 32], sizes = [8, 32], strides = [1, 1]} : vector<8x96xf32> to vector<8x32xf32>
    %114 = vector.extract_strided_slice %102 {offsets = [0, 32], sizes = [8, 32], strides = [1, 1]} : vector<8x96xf32> to vector<8x32xf32>
    %115 = arith.addf %113, %114 : vector<8x32xf32>
    %cst_59 = arith.constant 5.000000e-01 : f32
    %116 = vector.broadcast %cst_59 : f32 to vector<8x32xf32>
    %117 = arith.mulf %116, %115 : vector<8x32xf32>
    %118 = math.tanh %117 : vector<8x32xf32>
    %cst_60 = arith.constant 5.000000e-01 : f32
    %119 = vector.broadcast %cst_60 : f32 to vector<8x32xf32>
    %120 = arith.mulf %119, %118 : vector<8x32xf32>
    %cst_61 = arith.constant 5.000000e-01 : f32
    %121 = vector.broadcast %cst_61 : f32 to vector<8x32xf32>
    %122 = arith.addf %120, %121 : vector<8x32xf32>
    %123 = vector.extract_strided_slice %99 {offsets = [0, 64], sizes = [8, 32], strides = [1, 1]} : vector<8x96xf32> to vector<8x32xf32>
    %124 = vector.extract_strided_slice %102 {offsets = [0, 64], sizes = [8, 32], strides = [1, 1]} : vector<8x96xf32> to vector<8x32xf32>
    %125 = arith.mulf %112, %124 : vector<8x32xf32>
    %126 = arith.addf %123, %125 : vector<8x32xf32>
    %127 = math.tanh %126 : vector<8x32xf32>
    %cst_62 = arith.constant 1.000000e+00 : f32
    %128 = vector.broadcast %cst_62 : f32 to vector<8x32xf32>
    %129 = arith.subf %128, %122 : vector<8x32xf32>
    %130 = arith.mulf %129, %127 : vector<8x32xf32>
    %131 = arith.mulf %122, %96 : vector<8x32xf32>
    %132 = arith.addf %130, %131 : vector<8x32xf32>
    %cst_63 = arith.constant dense<0.000000e+00> : vector<8x96xf32>
    %133 = tpu.matmul %132, %3, %cst_63 {dimension_numbers = #tpu.dot_dimension_numbers<[1], [0], [0], [1], [0, 0, 1, 1], [], []>} : vector<8x32xf32>, vector<32x96xf32>, vector<8x96xf32> -> vector<8x96xf32>
    %134 = vector.broadcast %11 : vector<1x96xf32> to vector<8x96xf32>
    %135 = arith.addf %133, %134 : vector<8x96xf32>
    %cst_64 = arith.constant dense<0.000000e+00> : vector<8x96xf32>
    %136 = tpu.matmul %98, %7, %cst_64 {dimension_numbers = #tpu.dot_dimension_numbers<[1], [0], [0], [1], [0, 0, 1, 1], [], []>} : vector<8x32xf32>, vector<32x96xf32>, vector<8x96xf32> -> vector<8x96xf32>
    %137 = vector.broadcast %15 : vector<1x96xf32> to vector<8x96xf32>
    %138 = arith.addf %136, %137 : vector<8x96xf32>
    %139 = vector.extract_strided_slice %135 {offsets = [0, 0], sizes = [8, 32], strides = [1, 1]} : vector<8x96xf32> to vector<8x32xf32>
    %140 = vector.extract_strided_slice %138 {offsets = [0, 0], sizes = [8, 32], strides = [1, 1]} : vector<8x96xf32> to vector<8x32xf32>
    %141 = arith.addf %139, %140 : vector<8x32xf32>
    %cst_65 = arith.constant 5.000000e-01 : f32
    %142 = vector.broadcast %cst_65 : f32 to vector<8x32xf32>
    %143 = arith.mulf %142, %141 : vector<8x32xf32>
    %144 = math.tanh %143 : vector<8x32xf32>
    %cst_66 = arith.constant 5.000000e-01 : f32
    %145 = vector.broadcast %cst_66 : f32 to vector<8x32xf32>
    %146 = arith.mulf %145, %144 : vector<8x32xf32>
    %cst_67 = arith.constant 5.000000e-01 : f32
    %147 = vector.broadcast %cst_67 : f32 to vector<8x32xf32>
    %148 = arith.addf %146, %147 : vector<8x32xf32>
    %149 = vector.extract_strided_slice %135 {offsets = [0, 32], sizes = [8, 32], strides = [1, 1]} : vector<8x96xf32> to vector<8x32xf32>
    %150 = vector.extract_strided_slice %138 {offsets = [0, 32], sizes = [8, 32], strides = [1, 1]} : vector<8x96xf32> to vector<8x32xf32>
    %151 = arith.addf %149, %150 : vector<8x32xf32>
    %cst_68 = arith.constant 5.000000e-01 : f32
    %152 = vector.broadcast %cst_68 : f32 to vector<8x32xf32>
    %153 = arith.mulf %152, %151 : vector<8x32xf32>
    %154 = math.tanh %153 : vector<8x32xf32>
    %cst_69 = arith.constant 5.000000e-01 : f32
    %155 = vector.broadcast %cst_69 : f32 to vector<8x32xf32>
    %156 = arith.mulf %155, %154 : vector<8x32xf32>
    %cst_70 = arith.constant 5.000000e-01 : f32
    %157 = vector.broadcast %cst_70 : f32 to vector<8x32xf32>
    %158 = arith.addf %156, %157 : vector<8x32xf32>
    %159 = vector.extract_strided_slice %135 {offsets = [0, 64], sizes = [8, 32], strides = [1, 1]} : vector<8x96xf32> to vector<8x32xf32>
    %160 = vector.extract_strided_slice %138 {offsets = [0, 64], sizes = [8, 32], strides = [1, 1]} : vector<8x96xf32> to vector<8x32xf32>
    %161 = arith.mulf %148, %160 : vector<8x32xf32>
    %162 = arith.addf %159, %161 : vector<8x32xf32>
    %163 = math.tanh %162 : vector<8x32xf32>
    %cst_71 = arith.constant 1.000000e+00 : f32
    %164 = vector.broadcast %cst_71 : f32 to vector<8x32xf32>
    %165 = arith.subf %164, %158 : vector<8x32xf32>
    %166 = arith.mulf %165, %163 : vector<8x32xf32>
    %167 = arith.mulf %158, %98 : vector<8x32xf32>
    %168 = arith.addf %166, %167 : vector<8x32xf32>
    %c8_72 = arith.constant 8 : index
    %c0_73 = arith.constant 0 : index
    %169 = vector.load %arg5[%c8_72, %c0_73] : memref<64x32xf32, #tpu.memory_space<vmem>>, vector<8x32xf32>
    tpu.vector_store %arg5[%c8_72, %c0_73], %168 {strides = array<i32>} : memref<64x32xf32, #tpu.memory_space<vmem>>, vector<8x32xf32>,
    %c8_74 = arith.constant 8 : index
    %c0_75 = arith.constant 0 : index
    %170 = vector.load %arg1[%c8_74, %c0_75] : memref<64x1xf32, #tpu.memory_space<vmem>>, vector<8x1xf32>
    %171 = vector.broadcast %170 : vector<8x1xf32> to vector<8x32xf32>
    %172 = arith.mulf %132, %171 : vector<8x32xf32>
    %173 = vector.broadcast %170 : vector<8x1xf32> to vector<8x32xf32>
    %174 = arith.mulf %168, %173 : vector<8x32xf32>
    %c16 = arith.constant 16 : index
    %c0_76 = arith.constant 0 : index
    %175 = vector.load %arg6[%c16, %c0_76] : memref<64x96xf32, #tpu.memory_space<vmem>>, vector<8x96xf32>
    %cst_77 = arith.constant dense<0.000000e+00> : vector<8x96xf32>
    %176 = tpu.matmul %172, %5, %cst_77 {dimension_numbers = #tpu.dot_dimension_numbers<[1], [0], [0], [1], [0, 0, 1, 1], [], []>} : vector<8x32xf32>, vector<32x96xf32>, vector<8x96xf32> -> vector<8x96xf32>
    %177 = vector.broadcast %13 : vector<1x96xf32> to vector<8x96xf32>
    %178 = arith.addf %176, %177 : vector<8x96xf32>
    %179 = vector.extract_strided_slice %175 {offsets = [0, 0], sizes = [8, 32], strides = [1, 1]} : vector<8x96xf32> to vector<8x32xf32>
    %180 = vector.extract_strided_slice %178 {offsets = [0, 0], sizes = [8, 32], strides = [1, 1]} : vector<8x96xf32> to vector<8x32xf32>
    %181 = arith.addf %179, %180 : vector<8x32xf32>
    %cst_78 = arith.constant 5.000000e-01 : f32
    %182 = vector.broadcast %cst_78 : f32 to vector<8x32xf32>
    %183 = arith.mulf %182, %181 : vector<8x32xf32>
    %184 = math.tanh %183 : vector<8x32xf32>
    %cst_79 = arith.constant 5.000000e-01 : f32
    %185 = vector.broadcast %cst_79 : f32 to vector<8x32xf32>
    %186 = arith.mulf %185, %184 : vector<8x32xf32>
    %cst_80 = arith.constant 5.000000e-01 : f32
    %187 = vector.broadcast %cst_80 : f32 to vector<8x32xf32>
    %188 = arith.addf %186, %187 : vector<8x32xf32>
    %189 = vector.extract_strided_slice %175 {offsets = [0, 32], sizes = [8, 32], strides = [1, 1]} : vector<8x96xf32> to vector<8x32xf32>
    %190 = vector.extract_strided_slice %178 {offsets = [0, 32], sizes = [8, 32], strides = [1, 1]} : vector<8x96xf32> to vector<8x32xf32>
    %191 = arith.addf %189, %190 : vector<8x32xf32>
    %cst_81 = arith.constant 5.000000e-01 : f32
    %192 = vector.broadcast %cst_81 : f32 to vector<8x32xf32>
    %193 = arith.mulf %192, %191 : vector<8x32xf32>
    %194 = math.tanh %193 : vector<8x32xf32>
    %cst_82 = arith.constant 5.000000e-01 : f32
    %195 = vector.broadcast %cst_82 : f32 to vector<8x32xf32>
    %196 = arith.mulf %195, %194 : vector<8x32xf32>
    %cst_83 = arith.constant 5.000000e-01 : f32
    %197 = vector.broadcast %cst_83 : f32 to vector<8x32xf32>
    %198 = arith.addf %196, %197 : vector<8x32xf32>
    %199 = vector.extract_strided_slice %175 {offsets = [0, 64], sizes = [8, 32], strides = [1, 1]} : vector<8x96xf32> to vector<8x32xf32>
    %200 = vector.extract_strided_slice %178 {offsets = [0, 64], sizes = [8, 32], strides = [1, 1]} : vector<8x96xf32> to vector<8x32xf32>
    %201 = arith.mulf %188, %200 : vector<8x32xf32>
    %202 = arith.addf %199, %201 : vector<8x32xf32>
    %203 = math.tanh %202 : vector<8x32xf32>
    %cst_84 = arith.constant 1.000000e+00 : f32
    %204 = vector.broadcast %cst_84 : f32 to vector<8x32xf32>
    %205 = arith.subf %204, %198 : vector<8x32xf32>
    %206 = arith.mulf %205, %203 : vector<8x32xf32>
    %207 = arith.mulf %198, %172 : vector<8x32xf32>
    %208 = arith.addf %206, %207 : vector<8x32xf32>
    %cst_85 = arith.constant dense<0.000000e+00> : vector<8x96xf32>
    %209 = tpu.matmul %208, %3, %cst_85 {dimension_numbers = #tpu.dot_dimension_numbers<[1], [0], [0], [1], [0, 0, 1, 1], [], []>} : vector<8x32xf32>, vector<32x96xf32>, vector<8x96xf32> -> vector<8x96xf32>
    %210 = vector.broadcast %11 : vector<1x96xf32> to vector<8x96xf32>
    %211 = arith.addf %209, %210 : vector<8x96xf32>
    %cst_86 = arith.constant dense<0.000000e+00> : vector<8x96xf32>
    %212 = tpu.matmul %174, %7, %cst_86 {dimension_numbers = #tpu.dot_dimension_numbers<[1], [0], [0], [1], [0, 0, 1, 1], [], []>} : vector<8x32xf32>, vector<32x96xf32>, vector<8x96xf32> -> vector<8x96xf32>
    %213 = vector.broadcast %15 : vector<1x96xf32> to vector<8x96xf32>
    %214 = arith.addf %212, %213 : vector<8x96xf32>
    %215 = vector.extract_strided_slice %211 {offsets = [0, 0], sizes = [8, 32], strides = [1, 1]} : vector<8x96xf32> to vector<8x32xf32>
    %216 = vector.extract_strided_slice %214 {offsets = [0, 0], sizes = [8, 32], strides = [1, 1]} : vector<8x96xf32> to vector<8x32xf32>
    %217 = arith.addf %215, %216 : vector<8x32xf32>
    %cst_87 = arith.constant 5.000000e-01 : f32
    %218 = vector.broadcast %cst_87 : f32 to vector<8x32xf32>
    %219 = arith.mulf %218, %217 : vector<8x32xf32>
    %220 = math.tanh %219 : vector<8x32xf32>
    %cst_88 = arith.constant 5.000000e-01 : f32
    %221 = vector.broadcast %cst_88 : f32 to vector<8x32xf32>
    %222 = arith.mulf %221, %220 : vector<8x32xf32>
    %cst_89 = arith.constant 5.000000e-01 : f32
    %223 = vector.broadcast %cst_89 : f32 to vector<8x32xf32>
    %224 = arith.addf %222, %223 : vector<8x32xf32>
    %225 = vector.extract_strided_slice %211 {offsets = [0, 32], sizes = [8, 32], strides = [1, 1]} : vector<8x96xf32> to vector<8x32xf32>
    %226 = vector.extract_strided_slice %214 {offsets = [0, 32], sizes = [8, 32], strides = [1, 1]} : vector<8x96xf32> to vector<8x32xf32>
    %227 = arith.addf %225, %226 : vector<8x32xf32>
    %cst_90 = arith.constant 5.000000e-01 : f32
    %228 = vector.broadcast %cst_90 : f32 to vector<8x32xf32>
    %229 = arith.mulf %228, %227 : vector<8x32xf32>
    %230 = math.tanh %229 : vector<8x32xf32>
    %cst_91 = arith.constant 5.000000e-01 : f32
    %231 = vector.broadcast %cst_91 : f32 to vector<8x32xf32>
    %232 = arith.mulf %231, %230 : vector<8x32xf32>
    %cst_92 = arith.constant 5.000000e-01 : f32
    %233 = vector.broadcast %cst_92 : f32 to vector<8x32xf32>
    %234 = arith.addf %232, %233 : vector<8x32xf32>
    %235 = vector.extract_strided_slice %211 {offsets = [0, 64], sizes = [8, 32], strides = [1, 1]} : vector<8x96xf32> to vector<8x32xf32>
    %236 = vector.extract_strided_slice %214 {offsets = [0, 64], sizes = [8, 32], strides = [1, 1]} : vector<8x96xf32> to vector<8x32xf32>
    %237 = arith.mulf %224, %236 : vector<8x32xf32>
    %238 = arith.addf %235, %237 : vector<8x32xf32>
    %239 = math.tanh %238 : vector<8x32xf32>
    %cst_93 = arith.constant 1.000000e+00 : f32
    %240 = vector.broadcast %cst_93 : f32 to vector<8x32xf32>
    %241 = arith.subf %240, %234 : vector<8x32xf32>
    %242 = arith.mulf %241, %239 : vector<8x32xf32>
    %243 = arith.mulf %234, %174 : vector<8x32xf32>
    %244 = arith.addf %242, %243 : vector<8x32xf32>
    %c16_94 = arith.constant 16 : index
    %c0_95 = arith.constant 0 : index
    %245 = vector.load %arg5[%c16_94, %c0_95] : memref<64x32xf32, #tpu.memory_space<vmem>>, vector<8x32xf32>
    tpu.vector_store %arg5[%c16_94, %c0_95], %244 {strides = array<i32>} : memref<64x32xf32, #tpu.memory_space<vmem>>, vector<8x32xf32>,
    %c16_96 = arith.constant 16 : index
    %c0_97 = arith.constant 0 : index
    %246 = vector.load %arg1[%c16_96, %c0_97] : memref<64x1xf32, #tpu.memory_space<vmem>>, vector<8x1xf32>
    %247 = vector.broadcast %246 : vector<8x1xf32> to vector<8x32xf32>
    %248 = arith.mulf %208, %247 : vector<8x32xf32>
    %249 = vector.broadcast %246 : vector<8x1xf32> to vector<8x32xf32>
    %250 = arith.mulf %244, %249 : vector<8x32xf32>
    %c24 = arith.constant 24 : index
    %c0_98 = arith.constant 0 : index
    %251 = vector.load %arg6[%c24, %c0_98] : memref<64x96xf32, #tpu.memory_space<vmem>>, vector<8x96xf32>
    %cst_99 = arith.constant dense<0.000000e+00> : vector<8x96xf32>
    %252 = tpu.matmul %248, %5, %cst_99 {dimension_numbers = #tpu.dot_dimension_numbers<[1], [0], [0], [1], [0, 0, 1, 1], [], []>} : vector<8x32xf32>, vector<32x96xf32>, vector<8x96xf32> -> vector<8x96xf32>
    %253 = vector.broadcast %13 : vector<1x96xf32> to vector<8x96xf32>
    %254 = arith.addf %252, %253 : vector<8x96xf32>
    %255 = vector.extract_strided_slice %251 {offsets = [0, 0], sizes = [8, 32], strides = [1, 1]} : vector<8x96xf32> to vector<8x32xf32>
    %256 = vector.extract_strided_slice %254 {offsets = [0, 0], sizes = [8, 32], strides = [1, 1]} : vector<8x96xf32> to vector<8x32xf32>
    %257 = arith.addf %255, %256 : vector<8x32xf32>
    %cst_100 = arith.constant 5.000000e-01 : f32
    %258 = vector.broadcast %cst_100 : f32 to vector<8x32xf32>
    %259 = arith.mulf %258, %257 : vector<8x32xf32>
    %260 = math.tanh %259 : vector<8x32xf32>
    %cst_101 = arith.constant 5.000000e-01 : f32
    %261 = vector.broadcast %cst_101 : f32 to vector<8x32xf32>
    %262 = arith.mulf %261, %260 : vector<8x32xf32>
    %cst_102 = arith.constant 5.000000e-01 : f32
    %263 = vector.broadcast %cst_102 : f32 to vector<8x32xf32>
    %264 = arith.addf %262, %263 : vector<8x32xf32>
    %265 = vector.extract_strided_slice %251 {offsets = [0, 32], sizes = [8, 32], strides = [1, 1]} : vector<8x96xf32> to vector<8x32xf32>
    %266 = vector.extract_strided_slice %254 {offsets = [0, 32], sizes = [8, 32], strides = [1, 1]} : vector<8x96xf32> to vector<8x32xf32>
    %267 = arith.addf %265, %266 : vector<8x32xf32>
    %cst_103 = arith.constant 5.000000e-01 : f32
    %268 = vector.broadcast %cst_103 : f32 to vector<8x32xf32>
    %269 = arith.mulf %268, %267 : vector<8x32xf32>
    %270 = math.tanh %269 : vector<8x32xf32>
    %cst_104 = arith.constant 5.000000e-01 : f32
    %271 = vector.broadcast %cst_104 : f32 to vector<8x32xf32>
    %272 = arith.mulf %271, %270 : vector<8x32xf32>
    %cst_105 = arith.constant 5.000000e-01 : f32
    %273 = vector.broadcast %cst_105 : f32 to vector<8x32xf32>
    %274 = arith.addf %272, %273 : vector<8x32xf32>
    %275 = vector.extract_strided_slice %251 {offsets = [0, 64], sizes = [8, 32], strides = [1, 1]} : vector<8x96xf32> to vector<8x32xf32>
    %276 = vector.extract_strided_slice %254 {offsets = [0, 64], sizes = [8, 32], strides = [1, 1]} : vector<8x96xf32> to vector<8x32xf32>
    %277 = arith.mulf %264, %276 : vector<8x32xf32>
    %278 = arith.addf %275, %277 : vector<8x32xf32>
    %279 = math.tanh %278 : vector<8x32xf32>
    %cst_106 = arith.constant 1.000000e+00 : f32
    %280 = vector.broadcast %cst_106 : f32 to vector<8x32xf32>
    %281 = arith.subf %280, %274 : vector<8x32xf32>
    %282 = arith.mulf %281, %279 : vector<8x32xf32>
    %283 = arith.mulf %274, %248 : vector<8x32xf32>
    %284 = arith.addf %282, %283 : vector<8x32xf32>
    %cst_107 = arith.constant dense<0.000000e+00> : vector<8x96xf32>
    %285 = tpu.matmul %284, %3, %cst_107 {dimension_numbers = #tpu.dot_dimension_numbers<[1], [0], [0], [1], [0, 0, 1, 1], [], []>} : vector<8x32xf32>, vector<32x96xf32>, vector<8x96xf32> -> vector<8x96xf32>
    %286 = vector.broadcast %11 : vector<1x96xf32> to vector<8x96xf32>
    %287 = arith.addf %285, %286 : vector<8x96xf32>
    %cst_108 = arith.constant dense<0.000000e+00> : vector<8x96xf32>
    %288 = tpu.matmul %250, %7, %cst_108 {dimension_numbers = #tpu.dot_dimension_numbers<[1], [0], [0], [1], [0, 0, 1, 1], [], []>} : vector<8x32xf32>, vector<32x96xf32>, vector<8x96xf32> -> vector<8x96xf32>
    %289 = vector.broadcast %15 : vector<1x96xf32> to vector<8x96xf32>
    %290 = arith.addf %288, %289 : vector<8x96xf32>
    %291 = vector.extract_strided_slice %287 {offsets = [0, 0], sizes = [8, 32], strides = [1, 1]} : vector<8x96xf32> to vector<8x32xf32>
    %292 = vector.extract_strided_slice %290 {offsets = [0, 0], sizes = [8, 32], strides = [1, 1]} : vector<8x96xf32> to vector<8x32xf32>
    %293 = arith.addf %291, %292 : vector<8x32xf32>
    %cst_109 = arith.constant 5.000000e-01 : f32
    %294 = vector.broadcast %cst_109 : f32 to vector<8x32xf32>
    %295 = arith.mulf %294, %293 : vector<8x32xf32>
    %296 = math.tanh %295 : vector<8x32xf32>
    %cst_110 = arith.constant 5.000000e-01 : f32
    %297 = vector.broadcast %cst_110 : f32 to vector<8x32xf32>
    %298 = arith.mulf %297, %296 : vector<8x32xf32>
    %cst_111 = arith.constant 5.000000e-01 : f32
    %299 = vector.broadcast %cst_111 : f32 to vector<8x32xf32>
    %300 = arith.addf %298, %299 : vector<8x32xf32>
    %301 = vector.extract_strided_slice %287 {offsets = [0, 32], sizes = [8, 32], strides = [1, 1]} : vector<8x96xf32> to vector<8x32xf32>
    %302 = vector.extract_strided_slice %290 {offsets = [0, 32], sizes = [8, 32], strides = [1, 1]} : vector<8x96xf32> to vector<8x32xf32>
    %303 = arith.addf %301, %302 : vector<8x32xf32>
    %cst_112 = arith.constant 5.000000e-01 : f32
    %304 = vector.broadcast %cst_112 : f32 to vector<8x32xf32>
    %305 = arith.mulf %304, %303 : vector<8x32xf32>
    %306 = math.tanh %305 : vector<8x32xf32>
    %cst_113 = arith.constant 5.000000e-01 : f32
    %307 = vector.broadcast %cst_113 : f32 to vector<8x32xf32>
    %308 = arith.mulf %307, %306 : vector<8x32xf32>
    %cst_114 = arith.constant 5.000000e-01 : f32
    %309 = vector.broadcast %cst_114 : f32 to vector<8x32xf32>
    %310 = arith.addf %308, %309 : vector<8x32xf32>
    %311 = vector.extract_strided_slice %287 {offsets = [0, 64], sizes = [8, 32], strides = [1, 1]} : vector<8x96xf32> to vector<8x32xf32>
    %312 = vector.extract_strided_slice %290 {offsets = [0, 64], sizes = [8, 32], strides = [1, 1]} : vector<8x96xf32> to vector<8x32xf32>
    %313 = arith.mulf %300, %312 : vector<8x32xf32>
    %314 = arith.addf %311, %313 : vector<8x32xf32>
    %315 = math.tanh %314 : vector<8x32xf32>
    %cst_115 = arith.constant 1.000000e+00 : f32
    %316 = vector.broadcast %cst_115 : f32 to vector<8x32xf32>
    %317 = arith.subf %316, %310 : vector<8x32xf32>
    %318 = arith.mulf %317, %315 : vector<8x32xf32>
    %319 = arith.mulf %310, %250 : vector<8x32xf32>
    %320 = arith.addf %318, %319 : vector<8x32xf32>
    %c24_116 = arith.constant 24 : index
    %c0_117 = arith.constant 0 : index
    %321 = vector.load %arg5[%c24_116, %c0_117] : memref<64x32xf32, #tpu.memory_space<vmem>>, vector<8x32xf32>
    tpu.vector_store %arg5[%c24_116, %c0_117], %320 {strides = array<i32>} : memref<64x32xf32, #tpu.memory_space<vmem>>, vector<8x32xf32>,
    %c24_118 = arith.constant 24 : index
    %c0_119 = arith.constant 0 : index
    %322 = vector.load %arg1[%c24_118, %c0_119] : memref<64x1xf32, #tpu.memory_space<vmem>>, vector<8x1xf32>
    %323 = vector.broadcast %322 : vector<8x1xf32> to vector<8x32xf32>
    %324 = arith.mulf %284, %323 : vector<8x32xf32>
    %325 = vector.broadcast %322 : vector<8x1xf32> to vector<8x32xf32>
    %326 = arith.mulf %320, %325 : vector<8x32xf32>
    %c32_120 = arith.constant 32 : index
    %c0_121 = arith.constant 0 : index
    %327 = vector.load %arg6[%c32_120, %c0_121] : memref<64x96xf32, #tpu.memory_space<vmem>>, vector<8x96xf32>
    %cst_122 = arith.constant dense<0.000000e+00> : vector<8x96xf32>
    %328 = tpu.matmul %324, %5, %cst_122 {dimension_numbers = #tpu.dot_dimension_numbers<[1], [0], [0], [1], [0, 0, 1, 1], [], []>} : vector<8x32xf32>, vector<32x96xf32>, vector<8x96xf32> -> vector<8x96xf32>
    %329 = vector.broadcast %13 : vector<1x96xf32> to vector<8x96xf32>
    %330 = arith.addf %328, %329 : vector<8x96xf32>
    %331 = vector.extract_strided_slice %327 {offsets = [0, 0], sizes = [8, 32], strides = [1, 1]} : vector<8x96xf32> to vector<8x32xf32>
    %332 = vector.extract_strided_slice %330 {offsets = [0, 0], sizes = [8, 32], strides = [1, 1]} : vector<8x96xf32> to vector<8x32xf32>
    %333 = arith.addf %331, %332 : vector<8x32xf32>
    %cst_123 = arith.constant 5.000000e-01 : f32
    %334 = vector.broadcast %cst_123 : f32 to vector<8x32xf32>
    %335 = arith.mulf %334, %333 : vector<8x32xf32>
    %336 = math.tanh %335 : vector<8x32xf32>
    %cst_124 = arith.constant 5.000000e-01 : f32
    %337 = vector.broadcast %cst_124 : f32 to vector<8x32xf32>
    %338 = arith.mulf %337, %336 : vector<8x32xf32>
    %cst_125 = arith.constant 5.000000e-01 : f32
    %339 = vector.broadcast %cst_125 : f32 to vector<8x32xf32>
    %340 = arith.addf %338, %339 : vector<8x32xf32>
    %341 = vector.extract_strided_slice %327 {offsets = [0, 32], sizes = [8, 32], strides = [1, 1]} : vector<8x96xf32> to vector<8x32xf32>
    %342 = vector.extract_strided_slice %330 {offsets = [0, 32], sizes = [8, 32], strides = [1, 1]} : vector<8x96xf32> to vector<8x32xf32>
    %343 = arith.addf %341, %342 : vector<8x32xf32>
    %cst_126 = arith.constant 5.000000e-01 : f32
    %344 = vector.broadcast %cst_126 : f32 to vector<8x32xf32>
    %345 = arith.mulf %344, %343 : vector<8x32xf32>
    %346 = math.tanh %345 : vector<8x32xf32>
    %cst_127 = arith.constant 5.000000e-01 : f32
    %347 = vector.broadcast %cst_127 : f32 to vector<8x32xf32>
    %348 = arith.mulf %347, %346 : vector<8x32xf32>
    %cst_128 = arith.constant 5.000000e-01 : f32
    %349 = vector.broadcast %cst_128 : f32 to vector<8x32xf32>
    %350 = arith.addf %348, %349 : vector<8x32xf32>
    %351 = vector.extract_strided_slice %327 {offsets = [0, 64], sizes = [8, 32], strides = [1, 1]} : vector<8x96xf32> to vector<8x32xf32>
    %352 = vector.extract_strided_slice %330 {offsets = [0, 64], sizes = [8, 32], strides = [1, 1]} : vector<8x96xf32> to vector<8x32xf32>
    %353 = arith.mulf %340, %352 : vector<8x32xf32>
    %354 = arith.addf %351, %353 : vector<8x32xf32>
    %355 = math.tanh %354 : vector<8x32xf32>
    %cst_129 = arith.constant 1.000000e+00 : f32
    %356 = vector.broadcast %cst_129 : f32 to vector<8x32xf32>
    %357 = arith.subf %356, %350 : vector<8x32xf32>
    %358 = arith.mulf %357, %355 : vector<8x32xf32>
    %359 = arith.mulf %350, %324 : vector<8x32xf32>
    %360 = arith.addf %358, %359 : vector<8x32xf32>
    %cst_130 = arith.constant dense<0.000000e+00> : vector<8x96xf32>
    %361 = tpu.matmul %360, %3, %cst_130 {dimension_numbers = #tpu.dot_dimension_numbers<[1], [0], [0], [1], [0, 0, 1, 1], [], []>} : vector<8x32xf32>, vector<32x96xf32>, vector<8x96xf32> -> vector<8x96xf32>
    %362 = vector.broadcast %11 : vector<1x96xf32> to vector<8x96xf32>
    %363 = arith.addf %361, %362 : vector<8x96xf32>
    %cst_131 = arith.constant dense<0.000000e+00> : vector<8x96xf32>
    %364 = tpu.matmul %326, %7, %cst_131 {dimension_numbers = #tpu.dot_dimension_numbers<[1], [0], [0], [1], [0, 0, 1, 1], [], []>} : vector<8x32xf32>, vector<32x96xf32>, vector<8x96xf32> -> vector<8x96xf32>
    %365 = vector.broadcast %15 : vector<1x96xf32> to vector<8x96xf32>
    %366 = arith.addf %364, %365 : vector<8x96xf32>
    %367 = vector.extract_strided_slice %363 {offsets = [0, 0], sizes = [8, 32], strides = [1, 1]} : vector<8x96xf32> to vector<8x32xf32>
    %368 = vector.extract_strided_slice %366 {offsets = [0, 0], sizes = [8, 32], strides = [1, 1]} : vector<8x96xf32> to vector<8x32xf32>
    %369 = arith.addf %367, %368 : vector<8x32xf32>
    %cst_132 = arith.constant 5.000000e-01 : f32
    %370 = vector.broadcast %cst_132 : f32 to vector<8x32xf32>
    %371 = arith.mulf %370, %369 : vector<8x32xf32>
    %372 = math.tanh %371 : vector<8x32xf32>
    %cst_133 = arith.constant 5.000000e-01 : f32
    %373 = vector.broadcast %cst_133 : f32 to vector<8x32xf32>
    %374 = arith.mulf %373, %372 : vector<8x32xf32>
    %cst_134 = arith.constant 5.000000e-01 : f32
    %375 = vector.broadcast %cst_134 : f32 to vector<8x32xf32>
    %376 = arith.addf %374, %375 : vector<8x32xf32>
    %377 = vector.extract_strided_slice %363 {offsets = [0, 32], sizes = [8, 32], strides = [1, 1]} : vector<8x96xf32> to vector<8x32xf32>
    %378 = vector.extract_strided_slice %366 {offsets = [0, 32], sizes = [8, 32], strides = [1, 1]} : vector<8x96xf32> to vector<8x32xf32>
    %379 = arith.addf %377, %378 : vector<8x32xf32>
    %cst_135 = arith.constant 5.000000e-01 : f32
    %380 = vector.broadcast %cst_135 : f32 to vector<8x32xf32>
    %381 = arith.mulf %380, %379 : vector<8x32xf32>
    %382 = math.tanh %381 : vector<8x32xf32>
    %cst_136 = arith.constant 5.000000e-01 : f32
    %383 = vector.broadcast %cst_136 : f32 to vector<8x32xf32>
    %384 = arith.mulf %383, %382 : vector<8x32xf32>
    %cst_137 = arith.constant 5.000000e-01 : f32
    %385 = vector.broadcast %cst_137 : f32 to vector<8x32xf32>
    %386 = arith.addf %384, %385 : vector<8x32xf32>
    %387 = vector.extract_strided_slice %363 {offsets = [0, 64], sizes = [8, 32], strides = [1, 1]} : vector<8x96xf32> to vector<8x32xf32>
    %388 = vector.extract_strided_slice %366 {offsets = [0, 64], sizes = [8, 32], strides = [1, 1]} : vector<8x96xf32> to vector<8x32xf32>
    %389 = arith.mulf %376, %388 : vector<8x32xf32>
    %390 = arith.addf %387, %389 : vector<8x32xf32>
    %391 = math.tanh %390 : vector<8x32xf32>
    %cst_138 = arith.constant 1.000000e+00 : f32
    %392 = vector.broadcast %cst_138 : f32 to vector<8x32xf32>
    %393 = arith.subf %392, %386 : vector<8x32xf32>
    %394 = arith.mulf %393, %391 : vector<8x32xf32>
    %395 = arith.mulf %386, %326 : vector<8x32xf32>
    %396 = arith.addf %394, %395 : vector<8x32xf32>
    %c32_139 = arith.constant 32 : index
    %c0_140 = arith.constant 0 : index
    %397 = vector.load %arg5[%c32_139, %c0_140] : memref<64x32xf32, #tpu.memory_space<vmem>>, vector<8x32xf32>
    tpu.vector_store %arg5[%c32_139, %c0_140], %396 {strides = array<i32>} : memref<64x32xf32, #tpu.memory_space<vmem>>, vector<8x32xf32>,
    %c32_141 = arith.constant 32 : index
    %c0_142 = arith.constant 0 : index
    %398 = vector.load %arg1[%c32_141, %c0_142] : memref<64x1xf32, #tpu.memory_space<vmem>>, vector<8x1xf32>
    %399 = vector.broadcast %398 : vector<8x1xf32> to vector<8x32xf32>
    %400 = arith.mulf %360, %399 : vector<8x32xf32>
    %401 = vector.broadcast %398 : vector<8x1xf32> to vector<8x32xf32>
    %402 = arith.mulf %396, %401 : vector<8x32xf32>
    %c40 = arith.constant 40 : index
    %c0_143 = arith.constant 0 : index
    %403 = vector.load %arg6[%c40, %c0_143] : memref<64x96xf32, #tpu.memory_space<vmem>>, vector<8x96xf32>
    %cst_144 = arith.constant dense<0.000000e+00> : vector<8x96xf32>
    %404 = tpu.matmul %400, %5, %cst_144 {dimension_numbers = #tpu.dot_dimension_numbers<[1], [0], [0], [1], [0, 0, 1, 1], [], []>} : vector<8x32xf32>, vector<32x96xf32>, vector<8x96xf32> -> vector<8x96xf32>
    %405 = vector.broadcast %13 : vector<1x96xf32> to vector<8x96xf32>
    %406 = arith.addf %404, %405 : vector<8x96xf32>
    %407 = vector.extract_strided_slice %403 {offsets = [0, 0], sizes = [8, 32], strides = [1, 1]} : vector<8x96xf32> to vector<8x32xf32>
    %408 = vector.extract_strided_slice %406 {offsets = [0, 0], sizes = [8, 32], strides = [1, 1]} : vector<8x96xf32> to vector<8x32xf32>
    %409 = arith.addf %407, %408 : vector<8x32xf32>
    %cst_145 = arith.constant 5.000000e-01 : f32
    %410 = vector.broadcast %cst_145 : f32 to vector<8x32xf32>
    %411 = arith.mulf %410, %409 : vector<8x32xf32>
    %412 = math.tanh %411 : vector<8x32xf32>
    %cst_146 = arith.constant 5.000000e-01 : f32
    %413 = vector.broadcast %cst_146 : f32 to vector<8x32xf32>
    %414 = arith.mulf %413, %412 : vector<8x32xf32>
    %cst_147 = arith.constant 5.000000e-01 : f32
    %415 = vector.broadcast %cst_147 : f32 to vector<8x32xf32>
    %416 = arith.addf %414, %415 : vector<8x32xf32>
    %417 = vector.extract_strided_slice %403 {offsets = [0, 32], sizes = [8, 32], strides = [1, 1]} : vector<8x96xf32> to vector<8x32xf32>
    %418 = vector.extract_strided_slice %406 {offsets = [0, 32], sizes = [8, 32], strides = [1, 1]} : vector<8x96xf32> to vector<8x32xf32>
    %419 = arith.addf %417, %418 : vector<8x32xf32>
    %cst_148 = arith.constant 5.000000e-01 : f32
    %420 = vector.broadcast %cst_148 : f32 to vector<8x32xf32>
    %421 = arith.mulf %420, %419 : vector<8x32xf32>
    %422 = math.tanh %421 : vector<8x32xf32>
    %cst_149 = arith.constant 5.000000e-01 : f32
    %423 = vector.broadcast %cst_149 : f32 to vector<8x32xf32>
    %424 = arith.mulf %423, %422 : vector<8x32xf32>
    %cst_150 = arith.constant 5.000000e-01 : f32
    %425 = vector.broadcast %cst_150 : f32 to vector<8x32xf32>
    %426 = arith.addf %424, %425 : vector<8x32xf32>
    %427 = vector.extract_strided_slice %403 {offsets = [0, 64], sizes = [8, 32], strides = [1, 1]} : vector<8x96xf32> to vector<8x32xf32>
    %428 = vector.extract_strided_slice %406 {offsets = [0, 64], sizes = [8, 32], strides = [1, 1]} : vector<8x96xf32> to vector<8x32xf32>
    %429 = arith.mulf %416, %428 : vector<8x32xf32>
    %430 = arith.addf %427, %429 : vector<8x32xf32>
    %431 = math.tanh %430 : vector<8x32xf32>
    %cst_151 = arith.constant 1.000000e+00 : f32
    %432 = vector.broadcast %cst_151 : f32 to vector<8x32xf32>
    %433 = arith.subf %432, %426 : vector<8x32xf32>
    %434 = arith.mulf %433, %431 : vector<8x32xf32>
    %435 = arith.mulf %426, %400 : vector<8x32xf32>
    %436 = arith.addf %434, %435 : vector<8x32xf32>
    %cst_152 = arith.constant dense<0.000000e+00> : vector<8x96xf32>
    %437 = tpu.matmul %436, %3, %cst_152 {dimension_numbers = #tpu.dot_dimension_numbers<[1], [0], [0], [1], [0, 0, 1, 1], [], []>} : vector<8x32xf32>, vector<32x96xf32>, vector<8x96xf32> -> vector<8x96xf32>
    %438 = vector.broadcast %11 : vector<1x96xf32> to vector<8x96xf32>
    %439 = arith.addf %437, %438 : vector<8x96xf32>
    %cst_153 = arith.constant dense<0.000000e+00> : vector<8x96xf32>
    %440 = tpu.matmul %402, %7, %cst_153 {dimension_numbers = #tpu.dot_dimension_numbers<[1], [0], [0], [1], [0, 0, 1, 1], [], []>} : vector<8x32xf32>, vector<32x96xf32>, vector<8x96xf32> -> vector<8x96xf32>
    %441 = vector.broadcast %15 : vector<1x96xf32> to vector<8x96xf32>
    %442 = arith.addf %440, %441 : vector<8x96xf32>
    %443 = vector.extract_strided_slice %439 {offsets = [0, 0], sizes = [8, 32], strides = [1, 1]} : vector<8x96xf32> to vector<8x32xf32>
    %444 = vector.extract_strided_slice %442 {offsets = [0, 0], sizes = [8, 32], strides = [1, 1]} : vector<8x96xf32> to vector<8x32xf32>
    %445 = arith.addf %443, %444 : vector<8x32xf32>
    %cst_154 = arith.constant 5.000000e-01 : f32
    %446 = vector.broadcast %cst_154 : f32 to vector<8x32xf32>
    %447 = arith.mulf %446, %445 : vector<8x32xf32>
    %448 = math.tanh %447 : vector<8x32xf32>
    %cst_155 = arith.constant 5.000000e-01 : f32
    %449 = vector.broadcast %cst_155 : f32 to vector<8x32xf32>
    %450 = arith.mulf %449, %448 : vector<8x32xf32>
    %cst_156 = arith.constant 5.000000e-01 : f32
    %451 = vector.broadcast %cst_156 : f32 to vector<8x32xf32>
    %452 = arith.addf %450, %451 : vector<8x32xf32>
    %453 = vector.extract_strided_slice %439 {offsets = [0, 32], sizes = [8, 32], strides = [1, 1]} : vector<8x96xf32> to vector<8x32xf32>
    %454 = vector.extract_strided_slice %442 {offsets = [0, 32], sizes = [8, 32], strides = [1, 1]} : vector<8x96xf32> to vector<8x32xf32>
    %455 = arith.addf %453, %454 : vector<8x32xf32>
    %cst_157 = arith.constant 5.000000e-01 : f32
    %456 = vector.broadcast %cst_157 : f32 to vector<8x32xf32>
    %457 = arith.mulf %456, %455 : vector<8x32xf32>
    %458 = math.tanh %457 : vector<8x32xf32>
    %cst_158 = arith.constant 5.000000e-01 : f32
    %459 = vector.broadcast %cst_158 : f32 to vector<8x32xf32>
    %460 = arith.mulf %459, %458 : vector<8x32xf32>
    %cst_159 = arith.constant 5.000000e-01 : f32
    %461 = vector.broadcast %cst_159 : f32 to vector<8x32xf32>
    %462 = arith.addf %460, %461 : vector<8x32xf32>
    %463 = vector.extract_strided_slice %439 {offsets = [0, 64], sizes = [8, 32], strides = [1, 1]} : vector<8x96xf32> to vector<8x32xf32>
    %464 = vector.extract_strided_slice %442 {offsets = [0, 64], sizes = [8, 32], strides = [1, 1]} : vector<8x96xf32> to vector<8x32xf32>
    %465 = arith.mulf %452, %464 : vector<8x32xf32>
    %466 = arith.addf %463, %465 : vector<8x32xf32>
    %467 = math.tanh %466 : vector<8x32xf32>
    %cst_160 = arith.constant 1.000000e+00 : f32
    %468 = vector.broadcast %cst_160 : f32 to vector<8x32xf32>
    %469 = arith.subf %468, %462 : vector<8x32xf32>
    %470 = arith.mulf %469, %467 : vector<8x32xf32>
    %471 = arith.mulf %462, %402 : vector<8x32xf32>
    %472 = arith.addf %470, %471 : vector<8x32xf32>
    %c40_161 = arith.constant 40 : index
    %c0_162 = arith.constant 0 : index
    %473 = vector.load %arg5[%c40_161, %c0_162] : memref<64x32xf32, #tpu.memory_space<vmem>>, vector<8x32xf32>
    tpu.vector_store %arg5[%c40_161, %c0_162], %472 {strides = array<i32>} : memref<64x32xf32, #tpu.memory_space<vmem>>, vector<8x32xf32>,
    %c40_163 = arith.constant 40 : index
    %c0_164 = arith.constant 0 : index
    %474 = vector.load %arg1[%c40_163, %c0_164] : memref<64x1xf32, #tpu.memory_space<vmem>>, vector<8x1xf32>
    %475 = vector.broadcast %474 : vector<8x1xf32> to vector<8x32xf32>
    %476 = arith.mulf %436, %475 : vector<8x32xf32>
    %477 = vector.broadcast %474 : vector<8x1xf32> to vector<8x32xf32>
    %478 = arith.mulf %472, %477 : vector<8x32xf32>
    %c48 = arith.constant 48 : index
    %c0_165 = arith.constant 0 : index
    %479 = vector.load %arg6[%c48, %c0_165] : memref<64x96xf32, #tpu.memory_space<vmem>>, vector<8x96xf32>
    %cst_166 = arith.constant dense<0.000000e+00> : vector<8x96xf32>
    %480 = tpu.matmul %476, %5, %cst_166 {dimension_numbers = #tpu.dot_dimension_numbers<[1], [0], [0], [1], [0, 0, 1, 1], [], []>} : vector<8x32xf32>, vector<32x96xf32>, vector<8x96xf32> -> vector<8x96xf32>
    %481 = vector.broadcast %13 : vector<1x96xf32> to vector<8x96xf32>
    %482 = arith.addf %480, %481 : vector<8x96xf32>
    %483 = vector.extract_strided_slice %479 {offsets = [0, 0], sizes = [8, 32], strides = [1, 1]} : vector<8x96xf32> to vector<8x32xf32>
    %484 = vector.extract_strided_slice %482 {offsets = [0, 0], sizes = [8, 32], strides = [1, 1]} : vector<8x96xf32> to vector<8x32xf32>
    %485 = arith.addf %483, %484 : vector<8x32xf32>
    %cst_167 = arith.constant 5.000000e-01 : f32
    %486 = vector.broadcast %cst_167 : f32 to vector<8x32xf32>
    %487 = arith.mulf %486, %485 : vector<8x32xf32>
    %488 = math.tanh %487 : vector<8x32xf32>
    %cst_168 = arith.constant 5.000000e-01 : f32
    %489 = vector.broadcast %cst_168 : f32 to vector<8x32xf32>
    %490 = arith.mulf %489, %488 : vector<8x32xf32>
    %cst_169 = arith.constant 5.000000e-01 : f32
    %491 = vector.broadcast %cst_169 : f32 to vector<8x32xf32>
    %492 = arith.addf %490, %491 : vector<8x32xf32>
    %493 = vector.extract_strided_slice %479 {offsets = [0, 32], sizes = [8, 32], strides = [1, 1]} : vector<8x96xf32> to vector<8x32xf32>
    %494 = vector.extract_strided_slice %482 {offsets = [0, 32], sizes = [8, 32], strides = [1, 1]} : vector<8x96xf32> to vector<8x32xf32>
    %495 = arith.addf %493, %494 : vector<8x32xf32>
    %cst_170 = arith.constant 5.000000e-01 : f32
    %496 = vector.broadcast %cst_170 : f32 to vector<8x32xf32>
    %497 = arith.mulf %496, %495 : vector<8x32xf32>
    %498 = math.tanh %497 : vector<8x32xf32>
    %cst_171 = arith.constant 5.000000e-01 : f32
    %499 = vector.broadcast %cst_171 : f32 to vector<8x32xf32>
    %500 = arith.mulf %499, %498 : vector<8x32xf32>
    %cst_172 = arith.constant 5.000000e-01 : f32
    %501 = vector.broadcast %cst_172 : f32 to vector<8x32xf32>
    %502 = arith.addf %500, %501 : vector<8x32xf32>
    %503 = vector.extract_strided_slice %479 {offsets = [0, 64], sizes = [8, 32], strides = [1, 1]} : vector<8x96xf32> to vector<8x32xf32>
    %504 = vector.extract_strided_slice %482 {offsets = [0, 64], sizes = [8, 32], strides = [1, 1]} : vector<8x96xf32> to vector<8x32xf32>
    %505 = arith.mulf %492, %504 : vector<8x32xf32>
    %506 = arith.addf %503, %505 : vector<8x32xf32>
    %507 = math.tanh %506 : vector<8x32xf32>
    %cst_173 = arith.constant 1.000000e+00 : f32
    %508 = vector.broadcast %cst_173 : f32 to vector<8x32xf32>
    %509 = arith.subf %508, %502 : vector<8x32xf32>
    %510 = arith.mulf %509, %507 : vector<8x32xf32>
    %511 = arith.mulf %502, %476 : vector<8x32xf32>
    %512 = arith.addf %510, %511 : vector<8x32xf32>
    %cst_174 = arith.constant dense<0.000000e+00> : vector<8x96xf32>
    %513 = tpu.matmul %512, %3, %cst_174 {dimension_numbers = #tpu.dot_dimension_numbers<[1], [0], [0], [1], [0, 0, 1, 1], [], []>} : vector<8x32xf32>, vector<32x96xf32>, vector<8x96xf32> -> vector<8x96xf32>
    %514 = vector.broadcast %11 : vector<1x96xf32> to vector<8x96xf32>
    %515 = arith.addf %513, %514 : vector<8x96xf32>
    %cst_175 = arith.constant dense<0.000000e+00> : vector<8x96xf32>
    %516 = tpu.matmul %478, %7, %cst_175 {dimension_numbers = #tpu.dot_dimension_numbers<[1], [0], [0], [1], [0, 0, 1, 1], [], []>} : vector<8x32xf32>, vector<32x96xf32>, vector<8x96xf32> -> vector<8x96xf32>
    %517 = vector.broadcast %15 : vector<1x96xf32> to vector<8x96xf32>
    %518 = arith.addf %516, %517 : vector<8x96xf32>
    %519 = vector.extract_strided_slice %515 {offsets = [0, 0], sizes = [8, 32], strides = [1, 1]} : vector<8x96xf32> to vector<8x32xf32>
    %520 = vector.extract_strided_slice %518 {offsets = [0, 0], sizes = [8, 32], strides = [1, 1]} : vector<8x96xf32> to vector<8x32xf32>
    %521 = arith.addf %519, %520 : vector<8x32xf32>
    %cst_176 = arith.constant 5.000000e-01 : f32
    %522 = vector.broadcast %cst_176 : f32 to vector<8x32xf32>
    %523 = arith.mulf %522, %521 : vector<8x32xf32>
    %524 = math.tanh %523 : vector<8x32xf32>
    %cst_177 = arith.constant 5.000000e-01 : f32
    %525 = vector.broadcast %cst_177 : f32 to vector<8x32xf32>
    %526 = arith.mulf %525, %524 : vector<8x32xf32>
    %cst_178 = arith.constant 5.000000e-01 : f32
    %527 = vector.broadcast %cst_178 : f32 to vector<8x32xf32>
    %528 = arith.addf %526, %527 : vector<8x32xf32>
    %529 = vector.extract_strided_slice %515 {offsets = [0, 32], sizes = [8, 32], strides = [1, 1]} : vector<8x96xf32> to vector<8x32xf32>
    %530 = vector.extract_strided_slice %518 {offsets = [0, 32], sizes = [8, 32], strides = [1, 1]} : vector<8x96xf32> to vector<8x32xf32>
    %531 = arith.addf %529, %530 : vector<8x32xf32>
    %cst_179 = arith.constant 5.000000e-01 : f32
    %532 = vector.broadcast %cst_179 : f32 to vector<8x32xf32>
    %533 = arith.mulf %532, %531 : vector<8x32xf32>
    %534 = math.tanh %533 : vector<8x32xf32>
    %cst_180 = arith.constant 5.000000e-01 : f32
    %535 = vector.broadcast %cst_180 : f32 to vector<8x32xf32>
    %536 = arith.mulf %535, %534 : vector<8x32xf32>
    %cst_181 = arith.constant 5.000000e-01 : f32
    %537 = vector.broadcast %cst_181 : f32 to vector<8x32xf32>
    %538 = arith.addf %536, %537 : vector<8x32xf32>
    %539 = vector.extract_strided_slice %515 {offsets = [0, 64], sizes = [8, 32], strides = [1, 1]} : vector<8x96xf32> to vector<8x32xf32>
    %540 = vector.extract_strided_slice %518 {offsets = [0, 64], sizes = [8, 32], strides = [1, 1]} : vector<8x96xf32> to vector<8x32xf32>
    %541 = arith.mulf %528, %540 : vector<8x32xf32>
    %542 = arith.addf %539, %541 : vector<8x32xf32>
    %543 = math.tanh %542 : vector<8x32xf32>
    %cst_182 = arith.constant 1.000000e+00 : f32
    %544 = vector.broadcast %cst_182 : f32 to vector<8x32xf32>
    %545 = arith.subf %544, %538 : vector<8x32xf32>
    %546 = arith.mulf %545, %543 : vector<8x32xf32>
    %547 = arith.mulf %538, %478 : vector<8x32xf32>
    %548 = arith.addf %546, %547 : vector<8x32xf32>
    %c48_183 = arith.constant 48 : index
    %c0_184 = arith.constant 0 : index
    %549 = vector.load %arg5[%c48_183, %c0_184] : memref<64x32xf32, #tpu.memory_space<vmem>>, vector<8x32xf32>
    tpu.vector_store %arg5[%c48_183, %c0_184], %548 {strides = array<i32>} : memref<64x32xf32, #tpu.memory_space<vmem>>, vector<8x32xf32>,
    %c48_185 = arith.constant 48 : index
    %c0_186 = arith.constant 0 : index
    %550 = vector.load %arg1[%c48_185, %c0_186] : memref<64x1xf32, #tpu.memory_space<vmem>>, vector<8x1xf32>
    %551 = vector.broadcast %550 : vector<8x1xf32> to vector<8x32xf32>
    %552 = arith.mulf %512, %551 : vector<8x32xf32>
    %553 = vector.broadcast %550 : vector<8x1xf32> to vector<8x32xf32>
    %554 = arith.mulf %548, %553 : vector<8x32xf32>
    %c56 = arith.constant 56 : index
    %c0_187 = arith.constant 0 : index
    %555 = vector.load %arg6[%c56, %c0_187] : memref<64x96xf32, #tpu.memory_space<vmem>>, vector<8x96xf32>
    %cst_188 = arith.constant dense<0.000000e+00> : vector<8x96xf32>
    %556 = tpu.matmul %552, %5, %cst_188 {dimension_numbers = #tpu.dot_dimension_numbers<[1], [0], [0], [1], [0, 0, 1, 1], [], []>} : vector<8x32xf32>, vector<32x96xf32>, vector<8x96xf32> -> vector<8x96xf32>
    %557 = vector.broadcast %13 : vector<1x96xf32> to vector<8x96xf32>
    %558 = arith.addf %556, %557 : vector<8x96xf32>
    %559 = vector.extract_strided_slice %555 {offsets = [0, 0], sizes = [8, 32], strides = [1, 1]} : vector<8x96xf32> to vector<8x32xf32>
    %560 = vector.extract_strided_slice %558 {offsets = [0, 0], sizes = [8, 32], strides = [1, 1]} : vector<8x96xf32> to vector<8x32xf32>
    %561 = arith.addf %559, %560 : vector<8x32xf32>
    %cst_189 = arith.constant 5.000000e-01 : f32
    %562 = vector.broadcast %cst_189 : f32 to vector<8x32xf32>
    %563 = arith.mulf %562, %561 : vector<8x32xf32>
    %564 = math.tanh %563 : vector<8x32xf32>
    %cst_190 = arith.constant 5.000000e-01 : f32
    %565 = vector.broadcast %cst_190 : f32 to vector<8x32xf32>
    %566 = arith.mulf %565, %564 : vector<8x32xf32>
    %cst_191 = arith.constant 5.000000e-01 : f32
    %567 = vector.broadcast %cst_191 : f32 to vector<8x32xf32>
    %568 = arith.addf %566, %567 : vector<8x32xf32>
    %569 = vector.extract_strided_slice %555 {offsets = [0, 32], sizes = [8, 32], strides = [1, 1]} : vector<8x96xf32> to vector<8x32xf32>
    %570 = vector.extract_strided_slice %558 {offsets = [0, 32], sizes = [8, 32], strides = [1, 1]} : vector<8x96xf32> to vector<8x32xf32>
    %571 = arith.addf %569, %570 : vector<8x32xf32>
    %cst_192 = arith.constant 5.000000e-01 : f32
    %572 = vector.broadcast %cst_192 : f32 to vector<8x32xf32>
    %573 = arith.mulf %572, %571 : vector<8x32xf32>
    %574 = math.tanh %573 : vector<8x32xf32>
    %cst_193 = arith.constant 5.000000e-01 : f32
    %575 = vector.broadcast %cst_193 : f32 to vector<8x32xf32>
    %576 = arith.mulf %575, %574 : vector<8x32xf32>
    %cst_194 = arith.constant 5.000000e-01 : f32
    %577 = vector.broadcast %cst_194 : f32 to vector<8x32xf32>
    %578 = arith.addf %576, %577 : vector<8x32xf32>
    %579 = vector.extract_strided_slice %555 {offsets = [0, 64], sizes = [8, 32], strides = [1, 1]} : vector<8x96xf32> to vector<8x32xf32>
    %580 = vector.extract_strided_slice %558 {offsets = [0, 64], sizes = [8, 32], strides = [1, 1]} : vector<8x96xf32> to vector<8x32xf32>
    %581 = arith.mulf %568, %580 : vector<8x32xf32>
    %582 = arith.addf %579, %581 : vector<8x32xf32>
    %583 = math.tanh %582 : vector<8x32xf32>
    %cst_195 = arith.constant 1.000000e+00 : f32
    %584 = vector.broadcast %cst_195 : f32 to vector<8x32xf32>
    %585 = arith.subf %584, %578 : vector<8x32xf32>
    %586 = arith.mulf %585, %583 : vector<8x32xf32>
    %587 = arith.mulf %578, %552 : vector<8x32xf32>
    %588 = arith.addf %586, %587 : vector<8x32xf32>
    %cst_196 = arith.constant dense<0.000000e+00> : vector<8x96xf32>
    %589 = tpu.matmul %588, %3, %cst_196 {dimension_numbers = #tpu.dot_dimension_numbers<[1], [0], [0], [1], [0, 0, 1, 1], [], []>} : vector<8x32xf32>, vector<32x96xf32>, vector<8x96xf32> -> vector<8x96xf32>
    %590 = vector.broadcast %11 : vector<1x96xf32> to vector<8x96xf32>
    %591 = arith.addf %589, %590 : vector<8x96xf32>
    %cst_197 = arith.constant dense<0.000000e+00> : vector<8x96xf32>
    %592 = tpu.matmul %554, %7, %cst_197 {dimension_numbers = #tpu.dot_dimension_numbers<[1], [0], [0], [1], [0, 0, 1, 1], [], []>} : vector<8x32xf32>, vector<32x96xf32>, vector<8x96xf32> -> vector<8x96xf32>
    %593 = vector.broadcast %15 : vector<1x96xf32> to vector<8x96xf32>
    %594 = arith.addf %592, %593 : vector<8x96xf32>
    %595 = vector.extract_strided_slice %591 {offsets = [0, 0], sizes = [8, 32], strides = [1, 1]} : vector<8x96xf32> to vector<8x32xf32>
    %596 = vector.extract_strided_slice %594 {offsets = [0, 0], sizes = [8, 32], strides = [1, 1]} : vector<8x96xf32> to vector<8x32xf32>
    %597 = arith.addf %595, %596 : vector<8x32xf32>
    %cst_198 = arith.constant 5.000000e-01 : f32
    %598 = vector.broadcast %cst_198 : f32 to vector<8x32xf32>
    %599 = arith.mulf %598, %597 : vector<8x32xf32>
    %600 = math.tanh %599 : vector<8x32xf32>
    %cst_199 = arith.constant 5.000000e-01 : f32
    %601 = vector.broadcast %cst_199 : f32 to vector<8x32xf32>
    %602 = arith.mulf %601, %600 : vector<8x32xf32>
    %cst_200 = arith.constant 5.000000e-01 : f32
    %603 = vector.broadcast %cst_200 : f32 to vector<8x32xf32>
    %604 = arith.addf %602, %603 : vector<8x32xf32>
    %605 = vector.extract_strided_slice %591 {offsets = [0, 32], sizes = [8, 32], strides = [1, 1]} : vector<8x96xf32> to vector<8x32xf32>
    %606 = vector.extract_strided_slice %594 {offsets = [0, 32], sizes = [8, 32], strides = [1, 1]} : vector<8x96xf32> to vector<8x32xf32>
    %607 = arith.addf %605, %606 : vector<8x32xf32>
    %cst_201 = arith.constant 5.000000e-01 : f32
    %608 = vector.broadcast %cst_201 : f32 to vector<8x32xf32>
    %609 = arith.mulf %608, %607 : vector<8x32xf32>
    %610 = math.tanh %609 : vector<8x32xf32>
    %cst_202 = arith.constant 5.000000e-01 : f32
    %611 = vector.broadcast %cst_202 : f32 to vector<8x32xf32>
    %612 = arith.mulf %611, %610 : vector<8x32xf32>
    %cst_203 = arith.constant 5.000000e-01 : f32
    %613 = vector.broadcast %cst_203 : f32 to vector<8x32xf32>
    %614 = arith.addf %612, %613 : vector<8x32xf32>
    %615 = vector.extract_strided_slice %591 {offsets = [0, 64], sizes = [8, 32], strides = [1, 1]} : vector<8x96xf32> to vector<8x32xf32>
    %616 = vector.extract_strided_slice %594 {offsets = [0, 64], sizes = [8, 32], strides = [1, 1]} : vector<8x96xf32> to vector<8x32xf32>
    %617 = arith.mulf %604, %616 : vector<8x32xf32>
    %618 = arith.addf %615, %617 : vector<8x32xf32>
    %619 = math.tanh %618 : vector<8x32xf32>
    %cst_204 = arith.constant 1.000000e+00 : f32
    %620 = vector.broadcast %cst_204 : f32 to vector<8x32xf32>
    %621 = arith.subf %620, %614 : vector<8x32xf32>
    %622 = arith.mulf %621, %619 : vector<8x32xf32>
    %623 = arith.mulf %614, %554 : vector<8x32xf32>
    %624 = arith.addf %622, %623 : vector<8x32xf32>
    %c56_205 = arith.constant 56 : index
    %c0_206 = arith.constant 0 : index
    %625 = vector.load %arg5[%c56_205, %c0_206] : memref<64x32xf32, #tpu.memory_space<vmem>>, vector<8x32xf32>
    tpu.vector_store %arg5[%c56_205, %c0_206], %624 {strides = array<i32>} : memref<64x32xf32, #tpu.memory_space<vmem>>, vector<8x32xf32>,
    %c0_207 = arith.constant 0 : index
    %c0_208 = arith.constant 0 : index
    %626 = vector.load %arg5[%c0_207, %c0_208] : memref<64x32xf32, #tpu.memory_space<vmem>>, vector<64x32xf32>
    %c0_209 = arith.constant 0 : index
    %c0_210 = arith.constant 0 : index
    %627 = vector.load %arg4[%c0_209, %c0_210] : memref<33x32xf32, #tpu.memory_space<vmem>>, vector<32x32xf32>
    %cst_211 = arith.constant dense<0.000000e+00> : vector<64x32xf32>
    %628 = tpu.matmul %626, %627, %cst_211 {dimension_numbers = #tpu.dot_dimension_numbers<[1], [0], [0], [1], [0, 0, 1, 1], [], []>} : vector<64x32xf32>, vector<32x32xf32>, vector<64x32xf32> -> vector<64x32xf32>
    %c32_212 = arith.constant 32 : index
    %c0_213 = arith.constant 0 : index
    %629 = vector.load %arg4[%c32_212, %c0_213] : memref<33x32xf32, #tpu.memory_space<vmem>>, vector<1x32xf32>
    %630 = vector.broadcast %629 : vector<1x32xf32> to vector<64x32xf32>
    %631 = arith.addf %628, %630 : vector<64x32xf32>
    %632 = math.tanh %631 : vector<64x32xf32>
    %c0_214 = arith.constant 0 : index
    %c0_215 = arith.constant 0 : index
    %633 = vector.load %arg5[%c0_214, %c0_215] : memref<64x32xf32, #tpu.memory_space<vmem>>, vector<64x32xf32>
    tpu.vector_store %arg5[%c0_214, %c0_215], %632 {strides = array<i32>} : memref<64x32xf32, #tpu.memory_space<vmem>>, vector<64x32xf32>,
    return
  }
}

</mosaic_0001>

<bundles_post_ra>
// kernel: basic_gru4rec_forward.1
= control target key start
LH: loop header
LB: loop body
LE: loop exit
PB: predicated region body
PF: predicated region fallthrough
CT: control target
= control target key end

     0   :  { %vm58_vm0 = vcmask 261120   ;;  %v3419_v13 = vmov 0.0|0.0   ;;  %vm3420_vm1 = vmmov 0   ;;  %v3421_v19 = vmov 0.0   ;;  %s3422_s25 = smov 64   ;;  %s3424_s30 = smov 96   ;;  %s4099_s2 = inlined_call_operand.vmem [shape: f32[2,64,96], index: 2, kind: input, shape index: {}]   ;;  %s4100_s0 = inlined_call_operand.vmem [shape: f32[64,32], index: 0, kind: input, shape index: {}]   ;;  %s4101_s3 = inlined_call_operand.vmem [shape: f32[2,2,1,96], index: 3, kind: input, shape index: {}]   ;;  %s4102_s1 = inlined_call_operand.vmem [shape: f32[64,1], index: 1, kind: input, shape index: {}]   ;;  %s4103_s4 = inlined_call_operand.vmem [shape: f32[33,32], index: 4, kind: input, shape index: {}]   ;;  %s4104_s5 = inlined_call_operand.vmem [shape: f32[64,32], index: 5, kind: output, shape index: {}]  }
   0x1   :  { %v20_v0 = vld [vmem:[%s4099_s2] sm:$0xff]  ;;  %v21_v1 = vld [vmem:[%s4099_s2 + $0x8] sm:$0xff]  ;;  %v22_v2 = vld [vmem:[%s4099_s2 + $0x10] sm:$0xff]  ;;  %vm188_vm2 = vcmask 785408   ;;  %v3423_v45 = vmov 0  }
   0x2   :  { %v3164_v3 = vpack.c.bf16 %v21_v1, %v20_v0  ;;  %v23_v4 = vld [vmem:[%s4099_s2 + $0x18] sm:$0xff]  ;;  %v44_v5 = vld [vmem:[%s4100_s0] sm:$0xff]  ;;  %v30_v9 = vld [vmem:[%s4099_s2 + $0x28] sm:$0xff]  ;;  %3334 = vset.pattern.permute.xlu1 %v3423_v45  ;;  %3335 = vset.pattern.permute.xlu0 %v3423_v45 }
   0x3   :  { %v48_v6 = vld [vmem:[%s4100_s0 + $0x20] sm:$0xff]  ;;  %v3168_v7 = vpack.c.bf16 %v23_v4, %v22_v2  ;;  %2868 = vmatprep.mubr.msk.f32.mxu0 %vm58_vm0, %v44_v5  ;;  %v45_v10 = vld [vmem:[%s4100_s0 + $0x8] sm:$0xff]  ;;  %v50_v14 = vld [vmem:[%s4100_s0 + $0x30] sm:$0xff] }
   0x4   :  { %2874 = vmatprep.mubr.msk.f32.mxu1 %vm58_vm0, %v48_v6  ;;  %3165 = vmatprep.subr.bf16.mxu0 %v3164_v3  ;;  %v29_v8 = vld [vmem:[%s4099_s2 + $0x20] sm:$0xff]  ;;  %v49_v11 = vld [vmem:[%s4100_s0 + $0x28] sm:$0xff]  ;;  %v31_v15 = vld [vmem:[%s4099_s2 + $0x30] sm:$0xff] }
   0x5   :  { %3324 = vmatprep.subr.bf16.mxu1 %v3164_v3  ;;  %3167 = vmatpush3.bf16.msra.mxu0 %v3164_v3  ;;  %v3487_v12 = vpack.c.bf16 %v30_v9, %v29_v8  ;;  %v32_v16 = vld [vmem:[%s4099_s2 + $0x38] sm:$0xff]  ;;  %v3521_v20 = vld [vmem:[%s4101_s3] ss:$0 sm:$0xff]  ;;  %v3536_v33 = vld [vmem:[%s4101_s3 + $0x1] ss:$0 sm:$0xff] }
   0x6   :  { %3326 = vmatpush3.bf16.msra.mxu1 %v3164_v3  ;;  %3169 = vmatprep.subr.bf16.mxu0 %v3168_v7  ;;  %v51_v17 = vld [vmem:[%s4100_s0 + $0x38] sm:$0xff]  ;;  %v3507_v18 = vpack.c.bf16 %v32_v16, %v31_v15  ;;  %v2666_v48 = vld [vmem:[%s4099_s2 + $0x60] sm:$0xff]  ;;  %v2667_v49 = vld [vmem:[%s4099_s2 + $0x68] sm:$0xff] }
   0x7   :  { %3325 = vmatprep.subr.bf16.mxu1 %v3168_v7  ;;  %v3549_v50 = vpack.c.bf16 %v2667_v49, %v2666_v48  ;;  %v487_v52 = vld [vmem:[%s4102_s1] sm:$0xff]  ;;  %v46_v53 = vld [vmem:[%s4100_s0 + $0x10] sm:$0xff]  ;;  %v47_v54 = vld [vmem:[%s4100_s0 + $0x18] sm:$0xff] }
   0x8   :  { %v2668_v55 = vld [vmem:[%s4099_s2 + $0x70] sm:$0xff]  ;;  %v2669_v56 = vld [vmem:[%s4099_s2 + $0x78] sm:$0xff]  ;;  %v2662_v58 = vld [vmem:[%s4099_s2 + $0x40] sm:$0xff] }
   0x9   :  { %3171 = vmatpush3.bf16.msra.mxu0 %v3168_v7  ;;  %v3571_v57 = vpack.c.bf16 %v2669_v56, %v2668_v55  ;;  %v2663_v59 = vld [vmem:[%s4099_s2 + $0x48] sm:$0xff]  ;;  %v2664_v60 = vld [vmem:[%s4099_s2 + $0x50] sm:$0xff]  ;;  %v2665_v62 = vld [vmem:[%s4099_s2 + $0x58] sm:$0xff] }
   0xa   :  { %3327 = vmatpush3.bf16.msra.mxu1 %v3168_v7  ;;  %3184 = vmatprep.subr.bf16.mxu0 %v3419_v13  ;;  %v3584_v61 = vpack.c.bf16 %v2663_v59, %v2662_v58  ;;  %v3591_v63 = vpack.c.bf16 %v2665_v62, %v2664_v60 }
   0xb   :  { %3172 = vmatprep.subr.bf16.mxu1 %v3419_v13 }
   0xc   :  { %2869 = vmatmul.mubr.msk.f32.vlgmr.msra.gmra.mrb[0].mxu0 %vm58_vm0, %v45_v10 }
   0xd   :  { %2875 = vmatmul.mubr.msk.f32.vlgmr.msra.gmra.mrb[0].mxu1 %vm58_vm0, %v49_v11  ;;  %3186 = vmatpush3.bf16.msra.mxu0 %v3549_v50  ;;  %v3618_v11 = vld [vmem:[%s4101_s3 + $0x3] ss:$0 sm:$0xff] }
   0xe   :  { %3174 = vmatpush3.bf16.msra.mxu1 %v3487_v12  ;;  %2877 = vmatprep.mubr.msk.f32.mxu1 %vm58_vm0, %v50_v14 }
   0xf   :  { %3175 = vmatprep.subr.bf16.mxu1 %v3419_v13  ;;  %3187 = vmatprep.subr.bf16.mxu0 %v3419_v13 }
  0x10   :  { %2871 = vmatprep.mubr.msk.f32.mxu0 %vm58_vm0, %v46_v53 }
  0x11   :  { %2878 = vmatmul.mubr.msk.f32.gmra.mrb[2].mxu1 %vm58_vm0, %v51_v17  ;;  %2872 = vmatmul.mubr.msk.f32.gmra.mrb[2].mxu0 %vm58_vm0, %v47_v54 }
  0x12   :  { %3177 = vmatpush3.bf16.msra.mxu1 %v3507_v18  ;;  %2888 = vmatprep.mubr.msk.f32.mxu1 %vm3420_vm1, %v3421_v19 }
  0x13   :  { %3178 = vmatprep.subr.bf16.mxu1 %v3419_v13  ;;  %2910 = vmatprep.mubr.msk.f32.mxu0 %vm3420_vm1, %v3421_v19 }
  0x14   :  { %3189 = vmatpush3.bf16.msra.mxu0 %v3571_v57 }
  0x15   :  { %2889 = vmatmul.mubr.f32.vlgmr.msra.gmra.mrb[4].mxu1 %v3421_v19  ;;  %3196 = vmatprep.subr.bf16.mxu0 %v3419_v13 }
  0x16   :  { %2899 = vmatprep.mubr.msk.f32.mxu1 %vm3420_vm1, %v3421_v19  ;;  %3180 = vmatpush3.bf16.msra.mxu1 %v3584_v61 }
  0x17   :  { %3181 = vmatprep.subr.bf16.mxu1 %v3419_v13  ;;  %2911 = vmatmul.mubr.f32.vlgmr.msra.gmra.mrb[4].mxu0 %v3421_v19 }
  0x18   :  { %3198 = vmatpush3.bf16.msra.mxu0 %v3584_v61  ;;  %2932 = vmatprep.mubr.msk.f32.mxu0 %vm3420_vm1, %v3421_v19 }
  0x19   :  { %3199 = vmatprep.subr.bf16.mxu0 %v3419_v13 }
  0x1a   :  { %3183 = vmatpush3.bf16.msra.mxu1 %v3591_v63 }
  0x1b   :  { %3190 = vmatprep.subr.bf16.mxu1 %v3419_v13 }
  0x1c   :  { %3201 = vmatpush3.bf16.msra.mxu0 %v3591_v63 }
  0x1d   :  { %3208 = vmatprep.subr.bf16.mxu0 %v3419_v13 }
  0xdf   :  { %v2870_v21 = vpop.f32.mrb[0].mxu0 }
  0xe0   :  { %v2876_v22 = vpop.f32.mrb[0].mxu1  ;;  %v155_v23 = vadd.f32 %v2870_v21, %v3521_v20  ;;  %v149_v25 = vpop.f32.mrb[1].mxu0  ;;  %v3640_v21 = vld [vmem:[%s4101_s3 + $0x2] ss:$0 sm:$0xff] }
  0xe1   :  { %v175_v24 = vadd.f32 %v2876_v22, %v3521_v20  ;;  %v169_v26 = vpop.f32.mrb[1].mxu1  ;;  %v150_v27 = vadd.f32 %v3521_v20, %v149_v25 }
  0xe2   :  { %v170_v28 = vadd.f32 %v3521_v20, %v169_v26  ;;  %190 = vst.msk [vmem:[#allocation2 + $0x8] sm:$0xff] %vm188_vm2, %v155_v23 }
  0xe3   :  { %194 = vst.msk [vmem:[#allocation2 + $0x28] sm:$0xff] %vm188_vm2, %v175_v24  ;;  %189 = vst.msk [vmem:[#allocation2] sm:$0xff] %vm188_vm2, %v150_v27 }
  0xe4   :  { %193 = vst.msk [vmem:[#allocation2 + $0x20] sm:$0xff] %vm188_vm2, %v170_v28  ;;  %v2879_v29 = vpop.f32.mrb[2].mxu1  ;;  %v2873_v7 = vpop.f32.mrb[2].mxu0 }
  0xe5   :  { %v185_v30 = vadd.f32 %v2879_v29, %v3521_v20  ;;  %v179_v31 = vpop.f32.mrb[3].mxu1  ;;  %v165_v8 = vadd.f32 %v2873_v7, %v3521_v20  ;;  %v159_v9 = vpop.f32.mrb[3].mxu0 }
  0xe6   :  { %v180_v32 = vadd.f32 %v3521_v20, %v179_v31  ;;  %v160_v10 = vadd.f32 %v3521_v20, %v159_v9 }
  0xe7   :  { %196 = vst.msk [vmem:[#allocation2 + $0x38] sm:$0xff] %vm188_vm2, %v185_v30  ;;  %192 = vst.msk [vmem:[#allocation2 + $0x18] sm:$0xff] %vm188_vm2, %v165_v8 }
  0xe8   :  { %195 = vst.msk [vmem:[#allocation2 + $0x30] sm:$0xff] %vm188_vm2, %v180_v32  ;;  %v273_v34 = vpop.f32.mrb[4].mxu1  ;;  %191 = vst.msk [vmem:[#allocation2 + $0x10] sm:$0xff] %vm188_vm2, %v160_v10 }
  0xe9   :  { %v274_v35 = vadd.f32 %v3536_v33, %v273_v34  ;;  %v2890_v36 = vpop.f32.mrb[5].mxu1 }
  0xea   :  { %v197_v37 = vld [vmem:[#allocation2] sm:$0xff]  ;;  %v454_v14 = vpop.f32.mrb[4].mxu0  ;;  %v495_v36 = vld [vmem:[#allocation2 + $0x8] sm:$0xff] }
  0xeb   :  { %283 = vrot.lane.b32.xlu0 %v274_v35, %s3422_s25  ;;  %v277_v38 = vadd.f32 %v274_v35, %v197_v37  ;;  %v455_v15 = vadd.f32 %v3618_v11, %v454_v14  ;;  %v2912_v16 = vpop.f32.mrb[5].mxu0 }
  0xed   :  { %v278_v39 = vmul.f32 0.5, %v277_v38 }
  0xef   :  { %3336 = vtanh.f32 %v278_v39 }
  0xf9   :  { %v3337_v40 = vpop.eup %3336 }
  0xfa   :  { %v280_v41 = vmul.f32 0.5, %v3337_v40 }
  0xfc   :  { %v281_v42 = vadd.f32 0.5, %v280_v41 }
  0xfe   :  { %v293_v0 = vsub.f32 1.0, %v281_v42  ;;  %v299_v2 = vmul.f32 0.0, %v281_v42 }
 0x15d   :  { %v284_v43 = vpop.permute.xlu0 %283 }
 0x15e   :  { %v286_v44 = vmul.f32 %v284_v43, %v281_v42 }
 0x160   :  { %288 = vrot.lane.b32.xlu0 %v286_v44, %s3422_s25 }
 0x1d2   :  { %v289_v46 = vpop.permute.xlu0 %288 }
 0x1d3   :  { %v291_v47 = vadd.f32 %v289_v46, %v197_v37 }
 0x1d5   :  { %3338 = vtanh.f32 %v291_v47  ;;  %v774_v47 = vld [vmem:[%s4102_s1 + $0x8] sm:$0xff] }
 0x1df   :  { %v3339_v51 = vpop.eup %3338 }
 0x1e0   :  { %295 = vrot.lane.b32.xlu1 %v3339_v51, %s3424_s30 }
 0x1e4   :  { %490 = vperm.xlu1 %3334, %v487_v52  }
 0x252   :  { %v296_v1 = vpop.permute.xlu1 %295 }
 0x253   :  { %v298_v3 = vmul.f32 %v296_v1, %v293_v0 }
 0x255   :  { %v300_v4 = vadd.f32 %v299_v2, %v298_v3 }
 0x257   :  { %308 = vrot.lane.b32.xlu0 %v300_v4, %s3424_s30 }
 0x25b   :  { %464 = vrot.lane.b32.xlu0 %v455_v15, %s3422_s25 }
 0x263   :  { %v3605_v5 = vpop.permute.xlu1 %490 }
 0x264   :  { %v3608_v6 = vmul.f32 %v3605_v5, %v300_v4 }
 0x266   :  { %497 = vrot.lane.b32.xlu1 %v3608_v6, %s3424_s30 }
 0x2c9   :  { %v309_v17 = vpop.permute.xlu0 %308 }
 0x2ca   :  { %2900 = vmatmul.mubr.msk.f32.vlgmr.msra.gmra.mrb[6].mxu1 %vm58_vm0, %v309_v17 }
 0x2cb   :  { %3192 = vmatpush3.bf16.msra.mxu1 %v3487_v12  ;;  %2921 = vmatprep.mubr.msk.f32.mxu1 %vm3420_vm1, %v3421_v19 }
 0x2cc   :  { %3193 = vmatprep.subr.bf16.mxu1 %v3419_v13 }
 0x2cd   :  { %v465_v32 = vpop.permute.xlu0 %464 }
 0x2cf   :  { %3195 = vmatpush3.bf16.msra.mxu1 %v3507_v18 }
 0x2d0   :  { %3202 = vmatprep.subr.bf16.mxu1 %v3419_v13 }
 0x2d8   :  { %v498_v20 = vpop.permute.xlu1 %497 }
 0x2d9   :  { %2922 = vmatmul.mubr.msk.f32.vlgmr.msra.gmra.mrb[8].mxu1 %vm58_vm0, %v498_v20 }
 0x2da   :  { %3204 = vmatpush3.bf16.msra.mxu1 %v3549_v50  ;;  %2943 = vmatprep.mubr.msk.f32.mxu1 %vm3420_vm1, %v3421_v19 }
 0x2db   :  { %3205 = vmatprep.subr.bf16.mxu1 %v3419_v13 }
 0x2de   :  { %3207 = vmatpush3.bf16.msra.mxu1 %v3571_v57 }
 0x2df   :  { %3214 = vmatprep.subr.bf16.mxu1 %v3419_v13 }
 0x39d   :  { %v378_v22 = vpop.f32.mrb[6].mxu1 }
 0x39e   :  { %v379_v23 = vadd.f32 %v3640_v21, %v378_v22  ;;  %v2901_v24 = vpop.f32.mrb[7].mxu1 }
 0x3a0   :  { %v458_v25 = vadd.f32 %v455_v15, %v379_v23 }
 0x3a2   :  { %v459_v26 = vmul.f32 0.5, %v458_v25 }
 0x3a4   :  { %3340 = vtanh.f32 %v459_v26 }
 0x3ac   :  { %v567_v27 = vpop.f32.mrb[8].mxu1 }
 0x3ad   :  { %v568_v28 = vadd.f32 %v3536_v33, %v567_v27  ;;  %v2923_v29 = vpop.f32.mrb[9].mxu1 }
 0x3ae   :  { %v3341_v30 = vpop.eup %3340  ;;  %v782_v29 = vld [vmem:[#allocation2 + $0x10] sm:$0xff] }
 0x3af   :  { %577 = vrot.lane.b32.xlu1 %v568_v28, %s3422_s25  ;;  %v461_v31 = vmul.f32 0.5, %v3341_v30  ;;  %v571_v37 = vadd.f32 %v568_v28, %v495_v36 }
 0x3b1   :  { %v462_v34 = vadd.f32 0.5, %v461_v31  ;;  %v572_v38 = vmul.f32 0.5, %v571_v37 }
 0x3b3   :  { %v467_v35 = vmul.f32 %v465_v32, %v462_v34  ;;  %3342 = vtanh.f32 %v572_v38  ;;  %v474_v52 = vsub.f32 1.0, %v462_v34  ;;  %v480_v54 = vmul.f32 0.0, %v462_v34 }
 0x3b5   :  { %469 = vrot.lane.b32.xlu0 %v467_v35, %s3422_s25 }
 0x3bd   :  { %v3343_v39 = vpop.eup %3342 }
 0x3be   :  { %v574_v40 = vmul.f32 0.5, %v3343_v39 }
 0x3c0   :  { %v575_v41 = vadd.f32 0.5, %v574_v40 }
 0x3c2   :  { %v587_v59 = vsub.f32 1.0, %v575_v41  ;;  %v593_v62 = vmul.f32 %v575_v41, %v3608_v6 }
 0x421   :  { %v578_v42 = vpop.permute.xlu1 %577 }
 0x422   :  { %v580_v43 = vmul.f32 %v578_v42, %v575_v41  ;;  %v1061_v41 = vld [vmem:[%s4102_s1 + $0x10] sm:$0xff] }
 0x424   :  { %582 = vrot.lane.b32.xlu1 %v580_v43, %s3422_s25 }
 0x427   :  { %v470_v44 = vpop.permute.xlu0 %469 }
 0x428   :  { %v472_v45 = vadd.f32 %v470_v44, %v379_v23 }
 0x42a   :  { %3344 = vtanh.f32 %v472_v45 }
 0x434   :  { %v3345_v46 = vpop.eup %3344 }
 0x435   :  { %476 = vrot.lane.b32.xlu0 %v3345_v46, %s3424_s30 }
 0x439   :  { %777 = vperm.xlu0 %3335, %v774_v47  }
 0x496   :  { %v583_v48 = vpop.permute.xlu1 %582 }
 0x497   :  { %v585_v49 = vadd.f32 %v583_v48, %v495_v36 }
 0x499   :  { %3346 = vtanh.f32 %v585_v49 }
 0x4a3   :  { %v3347_v51 = vpop.eup %3346 }
 0x4a4   :  { %589 = vrot.lane.b32.xlu1 %v3347_v51, %s3424_s30 }
 0x4a7   :  { %v477_v53 = vpop.permute.xlu0 %476 }
 0x4a8   :  { %v479_v55 = vmul.f32 %v477_v53, %v474_v52 }
 0x4aa   :  { %v3652_v56 = vadd.f32 %v480_v54, %v479_v55 }
 0x4ac   :  { %v3656_v58 = vmul.f32 %v3605_v5, %v3652_v56 }
 0x4ae   :  { %671 = vrot.lane.b32.xlu1 %v3656_v58, %s3424_s30 }
 0x4b8   :  { %v3661_v1 = vpop.permute.xlu0 %777 }
 0x516   :  { %v590_v60 = vpop.permute.xlu1 %589 }
 0x517   :  { %v592_v0 = vmul.f32 %v590_v60, %v587_v59 }
 0x519   :  { %v594_v2 = vadd.f32 %v593_v62, %v592_v0 }
 0x51b   :  { %v3664_v3 = vmul.f32 %v3661_v1, %v594_v2  ;;  %596 = vrot.lane.b32.xlu1 %v594_v2, %s3424_s30 }
 0x51d   :  { %784 = vrot.lane.b32.xlu0 %v3664_v3, %s3424_s30 }
 0x520   :  { %v672_v4 = vpop.permute.xlu1 %671 }
 0x521   :  { %2944 = vmatmul.mubr.msk.f32.vlgmr.msra.gmra.mrb[10].mxu1 %vm58_vm0, %v672_v4 }
 0x522   :  { %3216 = vmatpush3.bf16.msra.mxu1 %v3584_v61  ;;  %2965 = vmatprep.mubr.msk.f32.mxu1 %vm3420_vm1, %v3421_v19 }
 0x523   :  { %3217 = vmatprep.subr.bf16.mxu1 %v3419_v13 }
 0x526   :  { %3219 = vmatpush3.bf16.msra.mxu1 %v3591_v63 }
 0x527   :  { %3226 = vmatprep.subr.bf16.mxu1 %v3419_v13 }
 0x58d   :  { %v597_v5 = vpop.permute.xlu1 %596 }
 0x58e   :  { %2933 = vmatmul.mubr.msk.f32.vlgmr.msra.gmra.mrb[6].mxu0 %vm58_vm0, %v597_v5 }
 0x58f   :  { %3210 = vmatpush3.bf16.msra.mxu0 %v3487_v12  ;;  %2954 = vmatprep.mubr.msk.f32.mxu0 %vm3420_vm1, %v3421_v19  ;;  %v785_v6 = vpop.permute.xlu0 %784 }
 0x590   :  { %3211 = vmatprep.subr.bf16.mxu0 %v3419_v13 }
 0x593   :  { %3213 = vmatpush3.bf16.msra.mxu0 %v3507_v18 }
 0x594   :  { %3220 = vmatprep.subr.bf16.mxu0 %v3419_v13 }
 0x596   :  { %2955 = vmatmul.mubr.msk.f32.vlgmr.msra.gmra.mrb[8].mxu0 %vm58_vm0, %v785_v6 }
 0x597   :  { %3222 = vmatpush3.bf16.msra.mxu0 %v3549_v50  ;;  %2976 = vmatprep.mubr.msk.f32.mxu0 %vm3420_vm1, %v3421_v19 }
 0x598   :  { %3223 = vmatprep.subr.bf16.mxu0 %v3419_v13 }
 0x59b   :  { %3225 = vmatpush3.bf16.msra.mxu0 %v3571_v57 }
 0x59c   :  { %3232 = vmatprep.subr.bf16.mxu0 %v3419_v13 }
 0x5f4   :  { %v741_v7 = vpop.f32.mrb[10].mxu1 }
 0x5f5   :  { %v742_v8 = vadd.f32 %v3618_v11, %v741_v7  ;;  %v2945_v9 = vpop.f32.mrb[11].mxu1 }
 0x5f7   :  { %751 = vrot.lane.b32.xlu1 %v742_v8, %s3422_s25 }
 0x661   :  { %v666_v10 = vpop.f32.mrb[6].mxu0 }
 0x662   :  { %v667_v14 = vadd.f32 %v3640_v21, %v666_v10  ;;  %v2934_v15 = vpop.f32.mrb[7].mxu0 }
 0x664   :  { %v745_v16 = vadd.f32 %v742_v8, %v667_v14 }
 0x666   :  { %v746_v17 = vmul.f32 0.5, %v745_v16 }
 0x668   :  { %3348 = vtanh.f32 %v746_v17 }
 0x669   :  { %v854_v20 = vpop.f32.mrb[8].mxu0  ;;  %v752_v27 = vpop.permute.xlu1 %751 }
 0x66a   :  { %v855_v22 = vadd.f32 %v3536_v33, %v854_v20  ;;  %v2956_v23 = vpop.f32.mrb[9].mxu0 }
 0x66c   :  { %864 = vrot.lane.b32.xlu0 %v855_v22, %s3422_s25  ;;  %v858_v30 = vadd.f32 %v855_v22, %v782_v29 }
 0x66e   :  { %v859_v31 = vmul.f32 0.5, %v858_v30 }
 0x670   :  { %3350 = vtanh.f32 %v859_v31 }
 0x672   :  { %v3349_v24 = vpop.eup %3348 }
 0x673   :  { %v748_v25 = vmul.f32 0.5, %v3349_v24  ;;  %v1069_v24 = vld [vmem:[#allocation2 + $0x18] sm:$0xff] }
 0x675   :  { %v749_v26 = vadd.f32 0.5, %v748_v25 }
 0x677   :  { %v754_v28 = vmul.f32 %v752_v27, %v749_v26  ;;  %v761_v45 = vsub.f32 1.0, %v749_v26  ;;  %v767_v47 = vmul.f32 %v749_v26, %v3656_v58 }
 0x679   :  { %756 = vrot.lane.b32.xlu1 %v754_v28, %s3422_s25 }
 0x67a   :  { %v3351_v32 = vpop.eup %3350 }
 0x67b   :  { %v861_v34 = vmul.f32 0.5, %v3351_v32 }
 0x67d   :  { %v862_v35 = vadd.f32 0.5, %v861_v34 }
 0x67f   :  { %v874_v52 = vsub.f32 1.0, %v862_v35  ;;  %v880_v54 = vmul.f32 %v862_v35, %v3664_v3 }
 0x6de   :  { %v865_v36 = vpop.permute.xlu0 %864 }
 0x6df   :  { %v867_v37 = vmul.f32 %v865_v36, %v862_v35  ;;  %v1348_v36 = vld [vmem:[%s4102_s1 + $0x18] sm:$0xff] }
 0x6e1   :  { %869 = vrot.lane.b32.xlu0 %v867_v37, %s3422_s25 }
 0x6eb   :  { %v757_v38 = vpop.permute.xlu1 %756 }
 0x6ec   :  { %v759_v39 = vadd.f32 %v757_v38, %v667_v14 }
 0x6ee   :  { %3352 = vtanh.f32 %v759_v39 }
 0x6f8   :  { %v3353_v40 = vpop.eup %3352 }
 0x6f9   :  { %763 = vrot.lane.b32.xlu1 %v3353_v40, %s3424_s30 }
 0x6fd   :  { %1064 = vperm.xlu1 %3334, %v1061_v41  }
 0x753   :  { %v870_v42 = vpop.permute.xlu0 %869 }
 0x754   :  { %v872_v43 = vadd.f32 %v870_v42, %v782_v29 }
 0x756   :  { %3354 = vtanh.f32 %v872_v43 }
 0x760   :  { %v3355_v44 = vpop.eup %3354 }
 0x761   :  { %876 = vrot.lane.b32.xlu0 %v3355_v44, %s3424_s30 }
 0x76b   :  { %v764_v46 = vpop.permute.xlu1 %763 }
 0x76c   :  { %v766_v48 = vmul.f32 %v764_v46, %v761_v45 }
 0x76e   :  { %v3703_v49 = vadd.f32 %v767_v47, %v766_v48 }
 0x770   :  { %v3707_v51 = vmul.f32 %v3661_v1, %v3703_v49 }
 0x772   :  { %958 = vrot.lane.b32.xlu0 %v3707_v51, %s3424_s30 }
 0x77c   :  { %v3712_v60 = vpop.permute.xlu1 %1064 }
 0x7d3   :  { %v877_v53 = vpop.permute.xlu0 %876 }
 0x7d4   :  { %v879_v55 = vmul.f32 %v877_v53, %v874_v52 }
 0x7d6   :  { %v881_v59 = vadd.f32 %v880_v54, %v879_v55 }
 0x7d8   :  { %883 = vrot.lane.b32.xlu1 %v881_v59, %s3424_s30  ;;  %v3716_v58 = vmul.f32 %v3712_v60, %v881_v59 }
 0x7da   :  { %1071 = vrot.lane.b32.xlu0 %v3716_v58, %s3424_s30 }
 0x7e4   :  { %v959_v62 = vpop.permute.xlu0 %958 }
 0x7e5   :  { %2977 = vmatmul.mubr.msk.f32.vlgmr.msra.gmra.mrb[10].mxu0 %vm58_vm0, %v959_v62 }
 0x7e6   :  { %3234 = vmatpush3.bf16.msra.mxu0 %v3584_v61  ;;  %2998 = vmatprep.mubr.msk.f32.mxu0 %vm3420_vm1, %v3421_v19 }
 0x7e7   :  { %3235 = vmatprep.subr.bf16.mxu0 %v3419_v13 }
 0x7ea   :  { %3237 = vmatpush3.bf16.msra.mxu0 %v3591_v63 }
 0x7eb   :  { %3244 = vmatprep.subr.bf16.mxu0 %v3419_v13 }
 0x84a   :  { %v884_v0 = vpop.permute.xlu1 %883 }
 0x84b   :  { %2966 = vmatmul.mubr.msk.f32.vlgmr.msra.gmra.mrb[12].mxu1 %vm58_vm0, %v884_v0 }
 0x84c   :  { %3228 = vmatpush3.bf16.msra.mxu1 %v3487_v12  ;;  %2987 = vmatprep.mubr.msk.f32.mxu1 %vm3420_vm1, %v3421_v19  ;;  %v1072_v1 = vpop.permute.xlu0 %1071 }
 0x84d   :  { %3229 = vmatprep.subr.bf16.mxu1 %v3419_v13 }
 0x850   :  { %3231 = vmatpush3.bf16.msra.mxu1 %v3507_v18 }
 0x851   :  { %3238 = vmatprep.subr.bf16.mxu1 %v3419_v13 }
 0x853   :  { %2988 = vmatmul.mubr.msk.f32.vlgmr.msra.gmra.mrb[14].mxu1 %vm58_vm0, %v1072_v1 }
 0x854   :  { %3240 = vmatpush3.bf16.msra.mxu1 %v3549_v50  ;;  %3009 = vmatprep.mubr.msk.f32.mxu1 %vm3420_vm1, %v3421_v19 }
 0x855   :  { %3241 = vmatprep.subr.bf16.mxu1 %v3419_v13 }
 0x858   :  { %3243 = vmatpush3.bf16.msra.mxu1 %v3571_v57 }
 0x859   :  { %3250 = vmatprep.subr.bf16.mxu1 %v3419_v13 }
 0x8b8   :  { %v1028_v2 = vpop.f32.mrb[10].mxu0 }
 0x8b9   :  { %v1029_v3 = vadd.f32 %v3618_v11, %v1028_v2  ;;  %v2978_v4 = vpop.f32.mrb[11].mxu0 }
 0x8bb   :  { %1038 = vrot.lane.b32.xlu1 %v1029_v3, %s3422_s25 }
 0x91e   :  { %v953_v5 = vpop.f32.mrb[12].mxu1 }
 0x91f   :  { %v954_v6 = vadd.f32 %v3640_v21, %v953_v5  ;;  %v2967_v7 = vpop.f32.mrb[13].mxu1 }
 0x921   :  { %v1032_v8 = vadd.f32 %v1029_v3, %v954_v6 }
 0x923   :  { %v1033_v9 = vmul.f32 0.5, %v1032_v8 }
 0x925   :  { %3356 = vtanh.f32 %v1033_v9 }
 0x926   :  { %v1141_v10 = vpop.f32.mrb[14].mxu1 }
 0x927   :  { %v1142_v14 = vadd.f32 %v3536_v33, %v1141_v10  ;;  %v2989_v15 = vpop.f32.mrb[15].mxu1 }
 0x929   :  { %1151 = vrot.lane.b32.xlu0 %v1142_v14, %s3422_s25  ;;  %v1145_v25 = vadd.f32 %v1142_v14, %v1069_v24 }
 0x92b   :  { %v1146_v26 = vmul.f32 0.5, %v1145_v25 }
 0x92d   :  { %v1039_v22 = vpop.permute.xlu1 %1038  ;;  %3358 = vtanh.f32 %v1146_v26 }
 0x92f   :  { %v3357_v16 = vpop.eup %3356 }
 0x930   :  { %v1035_v17 = vmul.f32 0.5, %v3357_v16 }
 0x932   :  { %v1036_v20 = vadd.f32 0.5, %v1035_v17  ;;  %v1356_v17 = vld [vmem:[#allocation2 + $0x20] sm:$0xff] }
 0x934   :  { %v1041_v23 = vmul.f32 %v1039_v22, %v1036_v20  ;;  %v1048_v40 = vsub.f32 1.0, %v1036_v20  ;;  %v1054_v42 = vmul.f32 %v1036_v20, %v3707_v51 }
 0x936   :  { %1043 = vrot.lane.b32.xlu1 %v1041_v23, %s3422_s25 }
 0x937   :  { %v3359_v27 = vpop.eup %3358 }
 0x938   :  { %v1148_v28 = vmul.f32 0.5, %v3359_v27 }
 0x93a   :  { %v1149_v29 = vadd.f32 0.5, %v1148_v28 }
 0x93c   :  { %v1161_v46 = vsub.f32 1.0, %v1149_v29  ;;  %v1167_v48 = vmul.f32 %v1149_v29, %v3716_v58 }
 0x99b   :  { %v1152_v30 = vpop.permute.xlu0 %1151 }
 0x99c   :  { %v1154_v31 = vmul.f32 %v1152_v30, %v1149_v29 }
 0x99e   :  { %1156 = vrot.lane.b32.xlu0 %v1154_v31, %s3422_s25  ;;  %v1635_v31 = vld [vmem:[%s4102_s1 + $0x20] sm:$0xff] }
 0x9a8   :  { %v1044_v32 = vpop.permute.xlu1 %1043 }
 0x9a9   :  { %v1046_v34 = vadd.f32 %v1044_v32, %v954_v6 }
 0x9ab   :  { %3360 = vtanh.f32 %v1046_v34 }
 0x9b5   :  { %v3361_v35 = vpop.eup %3360 }
 0x9b6   :  { %1050 = vrot.lane.b32.xlu1 %v3361_v35, %s3424_s30 }
 0x9ba   :  { %1351 = vperm.xlu1 %3334, %v1348_v36  }
 0xa10   :  { %v1157_v37 = vpop.permute.xlu0 %1156 }
 0xa11   :  { %v1159_v38 = vadd.f32 %v1157_v37, %v1069_v24 }
 0xa13   :  { %3362 = vtanh.f32 %v1159_v38 }
 0xa1d   :  { %v3363_v39 = vpop.eup %3362 }
 0xa1e   :  { %1163 = vrot.lane.b32.xlu0 %v3363_v39, %s3424_s30 }
 0xa28   :  { %v1051_v41 = vpop.permute.xlu1 %1050 }
 0xa29   :  { %v1053_v43 = vmul.f32 %v1051_v41, %v1048_v40 }
 0xa2b   :  { %v3754_v44 = vadd.f32 %v1054_v42, %v1053_v43 }
 0xa2d   :  { %v3758_v45 = vmul.f32 %v3712_v60, %v3754_v44 }
 0xa2f   :  { %1245 = vrot.lane.b32.xlu0 %v3758_v45, %s3424_s30 }
 0xa39   :  { %v3763_v54 = vpop.permute.xlu1 %1351 }
 0xa90   :  { %v1164_v47 = vpop.permute.xlu0 %1163 }
 0xa91   :  { %v1166_v52 = vmul.f32 %v1164_v47, %v1161_v46 }
 0xa93   :  { %v1168_v53 = vadd.f32 %v1167_v48, %v1166_v52 }
 0xa95   :  { %1170 = vrot.lane.b32.xlu1 %v1168_v53, %s3424_s30  ;;  %v3767_v51 = vmul.f32 %v3763_v54, %v1168_v53 }
 0xa97   :  { %1358 = vrot.lane.b32.xlu0 %v3767_v51, %s3424_s30 }
 0xaa1   :  { %v1246_v55 = vpop.permute.xlu0 %1245 }
 0xaa2   :  { %3010 = vmatmul.mubr.msk.f32.vlgmr.msra.gmra.mrb[16].mxu1 %vm58_vm0, %v1246_v55 }
 0xaa3   :  { %3252 = vmatpush3.bf16.msra.mxu1 %v3584_v61  ;;  %3031 = vmatprep.mubr.msk.f32.mxu1 %vm3420_vm1, %v3421_v19 }
 0xaa4   :  { %3253 = vmatprep.subr.bf16.mxu1 %v3419_v13 }
 0xaa7   :  { %3255 = vmatpush3.bf16.msra.mxu1 %v3591_v63 }
 0xaa8   :  { %3262 = vmatprep.subr.bf16.mxu1 %v3419_v13 }
 0xb07   :  { %v1171_v59 = vpop.permute.xlu1 %1170 }
 0xb08   :  { %2999 = vmatmul.mubr.msk.f32.vlgmr.msra.gmra.mrb[12].mxu0 %vm58_vm0, %v1171_v59 }
 0xb09   :  { %3246 = vmatpush3.bf16.msra.mxu0 %v3487_v12  ;;  %3020 = vmatprep.mubr.msk.f32.mxu0 %vm3420_vm1, %v3421_v19  ;;  %v1359_v60 = vpop.permute.xlu0 %1358 }
 0xb0a   :  { %3247 = vmatprep.subr.bf16.mxu0 %v3419_v13 }
 0xb0d   :  { %3249 = vmatpush3.bf16.msra.mxu0 %v3507_v18 }
 0xb0e   :  { %3256 = vmatprep.subr.bf16.mxu0 %v3419_v13 }
 0xb10   :  { %3021 = vmatmul.mubr.msk.f32.vlgmr.msra.gmra.mrb[14].mxu0 %vm58_vm0, %v1359_v60 }
 0xb11   :  { %3258 = vmatpush3.bf16.msra.mxu0 %v3549_v50  ;;  %3042 = vmatprep.mubr.msk.f32.mxu0 %vm3420_vm1, %v3421_v19 }
 0xb12   :  { %3259 = vmatprep.subr.bf16.mxu0 %v3419_v13 }
 0xb15   :  { %3261 = vmatpush3.bf16.msra.mxu0 %v3571_v57 }
 0xb16   :  { %3268 = vmatprep.subr.bf16.mxu0 %v3419_v13 }
 0xb75   :  { %v1315_v58 = vpop.f32.mrb[16].mxu1 }
 0xb76   :  { %v1316_v62 = vadd.f32 %v3618_v11, %v1315_v58  ;;  %v3011_v0 = vpop.f32.mrb[17].mxu1 }
 0xb78   :  { %1325 = vrot.lane.b32.xlu1 %v1316_v62, %s3422_s25 }
 0xbdb   :  { %v1240_v1 = vpop.f32.mrb[12].mxu0 }
 0xbdc   :  { %v1241_v2 = vadd.f32 %v3640_v21, %v1240_v1  ;;  %v3000_v3 = vpop.f32.mrb[13].mxu0 }
 0xbde   :  { %v1319_v4 = vadd.f32 %v1316_v62, %v1241_v2 }
 0xbe0   :  { %v1320_v5 = vmul.f32 0.5, %v1319_v4 }
 0xbe2   :  { %3364 = vtanh.f32 %v1320_v5 }
 0xbe3   :  { %v1428_v6 = vpop.f32.mrb[14].mxu0 }
 0xbe4   :  { %v1429_v7 = vadd.f32 %v3536_v33, %v1428_v6  ;;  %v3022_v8 = vpop.f32.mrb[15].mxu0 }
 0xbe6   :  { %1438 = vrot.lane.b32.xlu0 %v1429_v7, %s3422_s25  ;;  %v1432_v20 = vadd.f32 %v1429_v7, %v1356_v17 }
 0xbe8   :  { %v1433_v22 = vmul.f32 0.5, %v1432_v20 }
 0xbea   :  { %v1326_v15 = vpop.permute.xlu1 %1325  ;;  %3366 = vtanh.f32 %v1433_v22 }
 0xbec   :  { %v3365_v9 = vpop.eup %3364 }
 0xbed   :  { %v1322_v10 = vmul.f32 0.5, %v3365_v9 }
 0xbef   :  { %v1323_v14 = vadd.f32 0.5, %v1322_v10 }
 0xbf1   :  { %v1328_v16 = vmul.f32 %v1326_v15, %v1323_v14  ;;  %v1335_v36 = vsub.f32 1.0, %v1323_v14  ;;  %v1341_v38 = vmul.f32 %v1323_v14, %v3758_v45  ;;  %v1643_v14 = vld [vmem:[#allocation2 + $0x28] sm:$0xff] }
 0xbf3   :  { %1330 = vrot.lane.b32.xlu1 %v1328_v16, %s3422_s25 }
 0xbf4   :  { %v3367_v23 = vpop.eup %3366 }
 0xbf5   :  { %v1435_v24 = vmul.f32 0.5, %v3367_v23 }
 0xbf7   :  { %v1436_v25 = vadd.f32 0.5, %v1435_v24 }
 0xbf9   :  { %v1448_v42 = vsub.f32 1.0, %v1436_v25  ;;  %v1454_v46 = vmul.f32 %v1436_v25, %v3767_v51 }
 0xc58   :  { %v1439_v26 = vpop.permute.xlu0 %1438 }
 0xc59   :  { %v1441_v27 = vmul.f32 %v1439_v26, %v1436_v25 }
 0xc5b   :  { %1443 = vrot.lane.b32.xlu0 %v1441_v27, %s3422_s25 }
 0xc65   :  { %v1331_v28 = vpop.permute.xlu1 %1330 }
 0xc66   :  { %v1333_v29 = vadd.f32 %v1331_v28, %v1241_v2  ;;  %v1922_v28 = vld [vmem:[%s4102_s1 + $0x28] sm:$0xff] }
 0xc68   :  { %3368 = vtanh.f32 %v1333_v29 }
 0xc72   :  { %v3369_v30 = vpop.eup %3368 }
 0xc73   :  { %1337 = vrot.lane.b32.xlu1 %v3369_v30, %s3424_s30 }
 0xc77   :  { %1638 = vperm.xlu1 %3334, %v1635_v31  }
 0xccd   :  { %v1444_v32 = vpop.permute.xlu0 %1443 }
 0xcce   :  { %v1446_v34 = vadd.f32 %v1444_v32, %v1356_v17 }
 0xcd0   :  { %3370 = vtanh.f32 %v1446_v34 }
 0xcda   :  { %v3371_v35 = vpop.eup %3370 }
 0xcdb   :  { %1450 = vrot.lane.b32.xlu0 %v3371_v35, %s3424_s30 }
 0xce5   :  { %v1338_v37 = vpop.permute.xlu1 %1337 }
 0xce6   :  { %v1340_v39 = vmul.f32 %v1338_v37, %v1335_v36 }
 0xce8   :  { %v3805_v40 = vadd.f32 %v1341_v38, %v1340_v39 }
 0xcea   :  { %v3809_v41 = vmul.f32 %v3763_v54, %v3805_v40 }
 0xcec   :  { %1532 = vrot.lane.b32.xlu0 %v3809_v41, %s3424_s30 }
 0xcf6   :  { %v3814_v52 = vpop.permute.xlu1 %1638 }
 0xd4d   :  { %v1451_v43 = vpop.permute.xlu0 %1450 }
 0xd4e   :  { %v1453_v47 = vmul.f32 %v1451_v43, %v1448_v42 }
 0xd50   :  { %v1455_v48 = vadd.f32 %v1454_v46, %v1453_v47 }
 0xd52   :  { %1457 = vrot.lane.b32.xlu1 %v1455_v48, %s3424_s30  ;;  %v3818_v45 = vmul.f32 %v3814_v52, %v1455_v48 }
 0xd54   :  { %1645 = vrot.lane.b32.xlu0 %v3818_v45, %s3424_s30 }
 0xd5e   :  { %v1533_v53 = vpop.permute.xlu0 %1532 }
 0xd5f   :  { %3043 = vmatmul.mubr.msk.f32.vlgmr.msra.gmra.mrb[16].mxu0 %vm58_vm0, %v1533_v53 }
 0xd60   :  { %3270 = vmatpush3.bf16.msra.mxu0 %v3584_v61  ;;  %3064 = vmatprep.mubr.msk.f32.mxu0 %vm3420_vm1, %v3421_v19 }
 0xd61   :  { %3271 = vmatprep.subr.bf16.mxu0 %v3419_v13 }
 0xd64   :  { %3273 = vmatpush3.bf16.msra.mxu0 %v3591_v63 }
 0xd65   :  { %3280 = vmatprep.subr.bf16.mxu0 %v3419_v13 }
 0xdc4   :  { %v1458_v54 = vpop.permute.xlu1 %1457 }
 0xdc5   :  { %3032 = vmatmul.mubr.msk.f32.vlgmr.msra.gmra.mrb[18].mxu1 %vm58_vm0, %v1458_v54 }
 0xdc6   :  { %3264 = vmatpush3.bf16.msra.mxu1 %v3487_v12  ;;  %3053 = vmatprep.mubr.msk.f32.mxu1 %vm3420_vm1, %v3421_v19  ;;  %v1646_v51 = vpop.permute.xlu0 %1645 }
 0xdc7   :  { %3265 = vmatprep.subr.bf16.mxu1 %v3419_v13 }
 0xdca   :  { %3267 = vmatpush3.bf16.msra.mxu1 %v3507_v18 }
 0xdcb   :  { %3274 = vmatprep.subr.bf16.mxu1 %v3419_v13 }
 0xdcd   :  { %3054 = vmatmul.mubr.msk.f32.vlgmr.msra.gmra.mrb[20].mxu1 %vm58_vm0, %v1646_v51 }
 0xdce   :  { %3276 = vmatpush3.bf16.msra.mxu1 %v3549_v50  ;;  %3075 = vmatprep.mubr.msk.f32.mxu1 %vm3420_vm1, %v3421_v19 }
 0xdcf   :  { %3277 = vmatprep.subr.bf16.mxu1 %v3419_v13 }
 0xdd2   :  { %3279 = vmatpush3.bf16.msra.mxu1 %v3571_v57 }
 0xdd3   :  { %3286 = vmatprep.subr.bf16.mxu1 %v3419_v13 }
 0xe32   :  { %v1602_v55 = vpop.f32.mrb[16].mxu0 }
 0xe33   :  { %v1603_v59 = vadd.f32 %v3618_v11, %v1602_v55  ;;  %v3044_v60 = vpop.f32.mrb[17].mxu0 }
 0xe35   :  { %1612 = vrot.lane.b32.xlu1 %v1603_v59, %s3422_s25 }
 0xe98   :  { %v1527_v58 = vpop.f32.mrb[18].mxu1 }
 0xe99   :  { %v1528_v62 = vadd.f32 %v3640_v21, %v1527_v58  ;;  %v3033_v0 = vpop.f32.mrb[19].mxu1 }
 0xe9b   :  { %v1606_v1 = vadd.f32 %v1603_v59, %v1528_v62 }
 0xe9d   :  { %v1607_v2 = vmul.f32 0.5, %v1606_v1 }
 0xe9f   :  { %3372 = vtanh.f32 %v1607_v2 }
 0xea0   :  { %v1715_v3 = vpop.f32.mrb[20].mxu1 }
 0xea1   :  { %v1716_v4 = vadd.f32 %v3536_v33, %v1715_v3  ;;  %v3055_v5 = vpop.f32.mrb[21].mxu1 }
 0xea3   :  { %1725 = vrot.lane.b32.xlu0 %v1716_v4, %s3422_s25  ;;  %v1719_v15 = vadd.f32 %v1716_v4, %v1643_v14 }
 0xea5   :  { %v1720_v16 = vmul.f32 0.5, %v1719_v15 }
 0xea7   :  { %v1613_v9 = vpop.permute.xlu1 %1612  ;;  %3374 = vtanh.f32 %v1720_v16 }
 0xea9   :  { %v3373_v6 = vpop.eup %3372 }
 0xeaa   :  { %v1609_v7 = vmul.f32 0.5, %v3373_v6 }
 0xeac   :  { %v1610_v8 = vadd.f32 0.5, %v1609_v7 }
 0xeae   :  { %v1615_v10 = vmul.f32 %v1613_v9, %v1610_v8  ;;  %v1622_v32 = vsub.f32 1.0, %v1610_v8  ;;  %v1628_v35 = vmul.f32 %v1610_v8, %v3809_v41  ;;  %v1930_v9 = vld [vmem:[#allocation2 + $0x30] sm:$0xff] }
 0xeb0   :  { %1617 = vrot.lane.b32.xlu1 %v1615_v10, %s3422_s25 }
 0xeb1   :  { %v3375_v17 = vpop.eup %3374 }
 0xeb2   :  { %v1722_v20 = vmul.f32 0.5, %v3375_v17 }
 0xeb4   :  { %v1723_v22 = vadd.f32 0.5, %v1722_v20 }
 0xeb6   :  { %v1735_v39 = vsub.f32 1.0, %v1723_v22  ;;  %v1741_v43 = vmul.f32 %v1723_v22, %v3818_v45 }
 0xf15   :  { %v1726_v23 = vpop.permute.xlu0 %1725 }
 0xf16   :  { %v1728_v24 = vmul.f32 %v1726_v23, %v1723_v22 }
 0xf18   :  { %1730 = vrot.lane.b32.xlu0 %v1728_v24, %s3422_s25 }
 0xf22   :  { %v1618_v25 = vpop.permute.xlu1 %1617 }
 0xf23   :  { %v1620_v26 = vadd.f32 %v1618_v25, %v1528_v62  ;;  %v2209_v25 = vld [vmem:[%s4102_s1 + $0x30] sm:$0xff] }
 0xf25   :  { %3376 = vtanh.f32 %v1620_v26 }
 0xf2f   :  { %v3377_v27 = vpop.eup %3376 }
 0xf30   :  { %1624 = vrot.lane.b32.xlu1 %v3377_v27, %s3424_s30 }
 0xf34   :  { %1925 = vperm.xlu1 %3334, %v1922_v28  }
 0xf8a   :  { %v1731_v29 = vpop.permute.xlu0 %1730 }
 0xf8b   :  { %v1733_v30 = vadd.f32 %v1731_v29, %v1643_v14 }
 0xf8d   :  { %3378 = vtanh.f32 %v1733_v30 }
 0xf97   :  { %v3379_v31 = vpop.eup %3378 }
 0xf98   :  { %1737 = vrot.lane.b32.xlu0 %v3379_v31, %s3424_s30 }
 0xfa2   :  { %v1625_v34 = vpop.permute.xlu1 %1624 }
 0xfa3   :  { %v1627_v36 = vmul.f32 %v1625_v34, %v1622_v32 }
 0xfa5   :  { %v3856_v37 = vadd.f32 %v1628_v35, %v1627_v36 }
 0xfa7   :  { %v3860_v38 = vmul.f32 %v3814_v52, %v3856_v37 }
 0xfa9   :  { %1819 = vrot.lane.b32.xlu0 %v3860_v38, %s3424_s30 }
 0xfb3   :  { %v3865_v48 = vpop.permute.xlu1 %1925 }
0x100a   :  { %v1738_v42 = vpop.permute.xlu0 %1737 }
0x100b   :  { %v1740_v46 = vmul.f32 %v1738_v42, %v1735_v39 }
0x100d   :  { %v1742_v47 = vadd.f32 %v1741_v43, %v1740_v46 }
0x100f   :  { %1744 = vrot.lane.b32.xlu1 %v1742_v47, %s3424_s30  ;;  %v3869_v41 = vmul.f32 %v3865_v48, %v1742_v47 }
0x1011   :  { %1932 = vrot.lane.b32.xlu0 %v3869_v41, %s3424_s30 }
0x101b   :  { %v1820_v52 = vpop.permute.xlu0 %1819 }
0x101c   :  { %3076 = vmatmul.mubr.msk.f32.vlgmr.msra.gmra.mrb[22].mxu1 %vm58_vm0, %v1820_v52 }
0x101d   :  { %3288 = vmatpush3.bf16.msra.mxu1 %v3584_v61  ;;  %3097 = vmatprep.mubr.msk.f32.mxu1 %vm3420_vm1, %v3421_v19 }
0x101e   :  { %3289 = vmatprep.subr.bf16.mxu1 %v3419_v13 }
0x1021   :  { %3291 = vmatpush3.bf16.msra.mxu1 %v3591_v63 }
0x1022   :  { %3298 = vmatprep.subr.bf16.mxu1 %v3419_v13 }
0x1081   :  { %v1745_v45 = vpop.permute.xlu1 %1744 }
0x1082   :  { %3065 = vmatmul.mubr.msk.f32.vlgmr.msra.gmra.mrb[18].mxu0 %vm58_vm0, %v1745_v45 }
0x1083   :  { %3282 = vmatpush3.bf16.msra.mxu0 %v3487_v12  ;;  %3086 = vmatprep.mubr.msk.f32.mxu0 %vm3420_vm1, %v3421_v19  ;;  %v1933_v53 = vpop.permute.xlu0 %1932 }
0x1084   :  { %3283 = vmatprep.subr.bf16.mxu0 %v3419_v13 }
0x1087   :  { %3285 = vmatpush3.bf16.msra.mxu0 %v3507_v18 }
0x1088   :  { %3292 = vmatprep.subr.bf16.mxu0 %v3419_v13 }
0x108a   :  { %3087 = vmatmul.mubr.msk.f32.vlgmr.msra.gmra.mrb[20].mxu0 %vm58_vm0, %v1933_v53 }
0x108b   :  { %3294 = vmatpush3.bf16.msra.mxu0 %v3549_v50  ;;  %3108 = vmatprep.mubr.msk.f32.mxu0 %vm3420_vm1, %v3421_v19 }
0x108c   :  { %3295 = vmatprep.subr.bf16.mxu0 %v3419_v13 }
0x108f   :  { %3297 = vmatpush3.bf16.msra.mxu0 %v3571_v57 }
0x1090   :  { %3304 = vmatprep.subr.bf16.mxu0 %v3419_v13 }
0x10ef   :  { %v1889_v54 = vpop.f32.mrb[22].mxu1 }
0x10f0   :  { %v1890_v51 = vadd.f32 %v3618_v11, %v1889_v54  ;;  %v3077_v55 = vpop.f32.mrb[23].mxu1 }
0x10f2   :  { %1899 = vrot.lane.b32.xlu1 %v1890_v51, %s3422_s25 }
0x1155   :  { %v1814_v59 = vpop.f32.mrb[18].mxu0 }
0x1156   :  { %v1815_v60 = vadd.f32 %v3640_v21, %v1814_v59  ;;  %v3066_v58 = vpop.f32.mrb[19].mxu0 }
0x1158   :  { %v1893_v62 = vadd.f32 %v1890_v51, %v1815_v60 }
0x115a   :  { %v1894_v0 = vmul.f32 0.5, %v1893_v62 }
0x115c   :  { %3380 = vtanh.f32 %v1894_v0 }
0x115d   :  { %v2002_v1 = vpop.f32.mrb[20].mxu0 }
0x115e   :  { %v2003_v2 = vadd.f32 %v3536_v33, %v2002_v1  ;;  %v3088_v3 = vpop.f32.mrb[21].mxu0 }
0x1160   :  { %2012 = vrot.lane.b32.xlu0 %v2003_v2, %s3422_s25  ;;  %v2006_v10 = vadd.f32 %v2003_v2, %v1930_v9 }
0x1162   :  { %v2007_v14 = vmul.f32 0.5, %v2006_v10 }
0x1164   :  { %v1900_v7 = vpop.permute.xlu1 %1899  ;;  %3382 = vtanh.f32 %v2007_v14 }
0x1166   :  { %v3381_v4 = vpop.eup %3380 }
0x1167   :  { %v1896_v5 = vmul.f32 0.5, %v3381_v4 }
0x1169   :  { %v1897_v6 = vadd.f32 0.5, %v1896_v5 }
0x116b   :  { %v1902_v8 = vmul.f32 %v1900_v7, %v1897_v6  ;;  %v1909_v29 = vsub.f32 1.0, %v1897_v6  ;;  %v1915_v31 = vmul.f32 %v1897_v6, %v3860_v38 }
0x116d   :  { %1904 = vrot.lane.b32.xlu1 %v1902_v8, %s3422_s25 }
0x116e   :  { %v3383_v15 = vpop.eup %3382 }
0x116f   :  { %v2009_v16 = vmul.f32 0.5, %v3383_v15 }
0x1171   :  { %v2010_v17 = vadd.f32 0.5, %v2009_v16 }
0x1173   :  { %v2022_v36 = vsub.f32 1.0, %v2010_v17  ;;  %v2028_v42 = vmul.f32 %v2010_v17, %v3869_v41 }
0x11d2   :  { %v2013_v20 = vpop.permute.xlu0 %2012 }
0x11d3   :  { %v2015_v22 = vmul.f32 %v2013_v20, %v2010_v17 }
0x11d5   :  { %2017 = vrot.lane.b32.xlu0 %v2015_v22, %s3422_s25 }
0x11df   :  { %v1905_v33 = vpop.permute.xlu1 %1904 }
0x11e0   :  { %v1907_v23 = vadd.f32 %v1905_v33, %v1815_v60 }
0x11e2   :  { %3384 = vtanh.f32 %v1907_v23 }
0x11ec   :  { %v3385_v24 = vpop.eup %3384 }
0x11ed   :  { %1911 = vrot.lane.b32.xlu1 %v3385_v24, %s3424_s30 }
0x11f1   :  { %2212 = vperm.xlu1 %3334, %v2209_v25  }
0x1247   :  { %v2018_v26 = vpop.permute.xlu0 %2017 }
0x1248   :  { %v2020_v27 = vadd.f32 %v2018_v26, %v1930_v9 }
0x124a   :  { %3386 = vtanh.f32 %v2020_v27 }
0x1254   :  { %v3387_v28 = vpop.eup %3386 }
0x1255   :  { %2024 = vrot.lane.b32.xlu0 %v3387_v28, %s3424_s30 }
0x125f   :  { %v1912_v30 = vpop.permute.xlu1 %1911 }
0x1260   :  { %v1914_v32 = vmul.f32 %v1912_v30, %v1909_v29 }
0x1262   :  { %v3907_v34 = vadd.f32 %v1915_v31, %v1914_v32  ;;  %v3417_v31 = vld [vmem:[%s4101_s3 + $0x3] ss:$0 sm:$0xff] }
0x1264   :  { %v3911_v35 = vmul.f32 %v3865_v48, %v3907_v34 }
0x1266   :  { %2106 = vrot.lane.b32.xlu0 %v3911_v35, %s3424_s30 }
0x1270   :  { %v3916_v47 = vpop.permute.xlu1 %2212 }
0x12c7   :  { %v2025_v39 = vpop.permute.xlu0 %2024 }
0x12c8   :  { %v2027_v43 = vmul.f32 %v2025_v39, %v2022_v36  ;;  %v3418_v39 = vld [vmem:[%s4101_s3 + $0x2] ss:$0 sm:$0xff] }
0x12ca   :  { %v2029_v46 = vadd.f32 %v2028_v42, %v2027_v43 }
0x12cc   :  { %2031 = vrot.lane.b32.xlu1 %v2029_v46, %s3424_s30  ;;  %v3920_v38 = vmul.f32 %v3916_v47, %v2029_v46 }
0x12ce   :  { %2219 = vrot.lane.b32.xlu0 %v3920_v38, %s3424_s30 }
0x12d8   :  { %v2107_v48 = vpop.permute.xlu0 %2106 }
0x12d9   :  { %3109 = vmatmul.mubr.msk.f32.vlgmr.msra.gmra.mrb[22].mxu0 %vm58_vm0, %v2107_v48 }
0x12da   :  { %3306 = vmatpush3.bf16.msra.mxu0 %v3584_v61  ;;  %3130 = vmatprep.mubr.msk.f32.mxu0 %vm3420_vm1, %v3421_v19 }
0x12db   :  { %3307 = vmatprep.subr.bf16.mxu0 %v3419_v13 }
0x12de   :  { %3309 = vmatpush3.bf16.msra.mxu0 %v3591_v63 }
0x133e   :  { %v2032_v41 = vpop.permute.xlu1 %2031 }
0x133f   :  { %3098 = vmatmul.mubr.msk.f32.vlgmr.msra.gmra.mrb[24].mxu1 %vm58_vm0, %v2032_v41 }
0x1340   :  { %3300 = vmatpush3.bf16.msra.mxu1 %v3487_v12  ;;  %3119 = vmatprep.mubr.msk.f32.mxu1 %vm3420_vm1, %v3421_v19  ;;  %v2220_v61 = vpop.permute.xlu0 %2219 }
0x1341   :  { %3301 = vmatprep.subr.bf16.mxu1 %v3419_v13 }
0x1344   :  { %3303 = vmatpush3.bf16.msra.mxu1 %v3507_v18 }
0x1345   :  { %3310 = vmatprep.subr.bf16.mxu1 %v3419_v13 }
0x1347   :  { %3120 = vmatmul.mubr.msk.f32.vlgmr.msra.gmra.mrb[26].mxu1 %vm58_vm0, %v2220_v61 }
0x1348   :  { %3312 = vmatpush3.bf16.msra.mxu1 %v3549_v50  ;;  %3141 = vmatprep.mubr.msk.f32.mxu1 %vm3420_vm1, %v3421_v19 }
0x1349   :  { %3313 = vmatprep.subr.bf16.mxu1 %v3419_v13  ;;  %v3416_v13 = vld [vmem:[%s4101_s3 + $0x1] ss:$0 sm:$0xff] }
0x134c   :  { %3315 = vmatpush3.bf16.msra.mxu1 %v3571_v57 }
0x13ac   :  { %v2176_v12 = vpop.f32.mrb[22].mxu0 }
0x13ad   :  { %v2177_v63 = vadd.f32 %v3618_v11, %v2176_v12  ;;  %v3110_v52 = vpop.f32.mrb[23].mxu0 }
0x13af   :  { %2186 = vrot.lane.b32.xlu1 %v2177_v63, %s3422_s25 }
0x1412   :  { %v2101_v18 = vpop.f32.mrb[24].mxu1 }
0x1413   :  { %v2102_v45 = vadd.f32 %v3640_v21, %v2101_v18  ;;  %v3099_v53 = vpop.f32.mrb[25].mxu1  ;;  %v2217_v21 = vld [vmem:[#allocation2 + $0x38] sm:$0xff]  ;;  %v2504_v18 = vld [vmem:[%s4103_s4] sm:$0xff] }
0x1415   :  { %v2180_v54 = vadd.f32 %v2177_v63, %v2102_v45 }
0x1417   :  { %v2181_v51 = vmul.f32 0.5, %v2180_v54 }
0x1419   :  { %3388 = vtanh.f32 %v2181_v51 }
0x141a   :  { %v2289_v50 = vpop.f32.mrb[26].mxu1 }
0x141b   :  { %v2290_v19 = vadd.f32 %v3416_v13, %v2289_v50  ;;  %v3121_v57 = vpop.f32.mrb[27].mxu1 }
0x141d   :  { %2299 = vrot.lane.b32.xlu0 %v2290_v19, %s3422_s25  ;;  %v2293_v62 = vadd.f32 %v2290_v19, %v2217_v21 }
0x141f   :  { %v2294_v0 = vmul.f32 0.5, %v2293_v62 }
0x1421   :  { %v2187_v60 = vpop.permute.xlu1 %2186  ;;  %3390 = vtanh.f32 %v2294_v0 }
0x1423   :  { %v3389_v11 = vpop.eup %3388 }
0x1424   :  { %v2183_v55 = vmul.f32 0.5, %v3389_v11 }
0x1426   :  { %v2184_v59 = vadd.f32 0.5, %v2183_v55 }
0x1428   :  { %v2189_v58 = vmul.f32 %v2187_v60, %v2184_v59  ;;  %v2196_v15 = vsub.f32 1.0, %v2184_v59  ;;  %v2202_v17 = vmul.f32 %v2184_v59, %v3911_v35 }
0x142a   :  { %2191 = vrot.lane.b32.xlu1 %v2189_v58, %s3422_s25 }
0x142b   :  { %v3391_v1 = vpop.eup %3390 }
0x142c   :  { %v2296_v2 = vmul.f32 0.5, %v3391_v1 }
0x142e   :  { %v2297_v3 = vadd.f32 0.5, %v2296_v2 }
0x1430   :  { %v2309_v23 = vsub.f32 1.0, %v2297_v3  ;;  %v2315_v25 = vmul.f32 %v2297_v3, %v3920_v38 }
0x148f   :  { %v2300_v4 = vpop.permute.xlu0 %2299 }
0x1490   :  { %v2302_v5 = vmul.f32 %v2300_v4, %v2297_v3 }
0x1492   :  { %2304 = vrot.lane.b32.xlu0 %v2302_v5, %s3422_s25 }
0x149c   :  { %v2192_v6 = vpop.permute.xlu1 %2191 }
0x149d   :  { %v2194_v7 = vadd.f32 %v2192_v6, %v2102_v45  ;;  %v2505_v45 = vld [vmem:[%s4103_s4 + $0x8] sm:$0xff]  ;;  %v2707_v6 = vld [vmem:[%s4103_s4 + $0x20] ss:$0 sm:$0xff] }
0x149f   :  { %3392 = vtanh.f32 %v2194_v7 }
0x14a9   :  { %v3393_v8 = vpop.eup %3392 }
0x14aa   :  { %2198 = vrot.lane.b32.xlu1 %v3393_v8, %s3424_s30 }
0x1504   :  { %v2305_v9 = vpop.permute.xlu0 %2304 }
0x1505   :  { %v2307_v10 = vadd.f32 %v2305_v9, %v2217_v21 }
0x1507   :  { %3394 = vtanh.f32 %v2307_v10 }
0x1511   :  { %v3395_v14 = vpop.eup %3394 }
0x1512   :  { %2311 = vrot.lane.b32.xlu0 %v3395_v14, %s3424_s30 }
0x151c   :  { %v2199_v16 = vpop.permute.xlu1 %2198 }
0x151d   :  { %v2201_v20 = vmul.f32 %v2199_v16, %v2196_v15 }
0x151f   :  { %v2203_v22 = vadd.f32 %v2202_v17, %v2201_v20 }
0x1521   :  { %v3956_v33 = vmul.f32 %v3916_v47, %v2203_v22 }
0x1523   :  { %2393 = vrot.lane.b32.xlu1 %v3956_v33, %s3424_s30 }
0x1584   :  { %v2312_v24 = vpop.permute.xlu0 %2311 }
0x1585   :  { %v2314_v26 = vmul.f32 %v2312_v24, %v2309_v23 }
0x1587   :  { %v2316_v27 = vadd.f32 %v2315_v25, %v2314_v26 }
0x1589   :  { %2318 = vrot.lane.b32.xlu0 %v2316_v27, %s3424_s30 }
0x1595   :  { %v2394_v28 = vpop.permute.xlu1 %2393 }
0x1596   :  { %3142 = vmatmul.mubr.msk.f32.vlgmr.msra.gmra.mrb[28].mxu1 %vm58_vm0, %v2394_v28 }
0x15fb   :  { %v2319_v29 = vpop.permute.xlu0 %2318 }
0x15fc   :  { %3131 = vmatmul.mubr.msk.f32.vlgmr.msra.gmra.mrb[24].mxu0 %vm58_vm0, %v2319_v29 }
0x1669   :  { %v2463_v30 = vpop.f32.mrb[28].mxu1 }
0x166a   :  { %v2464_v32 = vadd.f32 %v3417_v31, %v2463_v30  ;;  %v3143_v35 = vpop.f32.mrb[29].mxu1 }
0x166c   :  { %2473 = vrot.lane.b32.xlu1 %v2464_v32, %s3422_s25 }
0x16cf   :  { %v2388_v36 = vpop.f32.mrb[24].mxu0 }
0x16d0   :  { %v2389_v42 = vadd.f32 %v3418_v39, %v2388_v36  ;;  %v3132_v43 = vpop.f32.mrb[25].mxu0 }
0x16d2   :  { %v2467_v46 = vadd.f32 %v2464_v32, %v2389_v42 }
0x16d4   :  { %v2468_v47 = vmul.f32 0.5, %v2467_v46 }
0x16d6   :  { %3396 = vtanh.f32 %v2468_v47 }
0x16de   :  { %v2474_v61 = vpop.permute.xlu1 %2473 }
0x16e0   :  { %v3397_v38 = vpop.eup %3396 }
0x16e1   :  { %v2470_v48 = vmul.f32 0.5, %v3397_v38 }
0x16e3   :  { %v2471_v41 = vadd.f32 0.5, %v2470_v48 }
0x16e5   :  { %v2476_v12 = vmul.f32 %v2474_v61, %v2471_v41  ;;  %v2483_v11 = vsub.f32 1.0, %v2471_v41  ;;  %v2489_v59 = vmul.f32 %v2471_v41, %v3956_v33 }
0x16e7   :  { %2478 = vrot.lane.b32.xlu0 %v2476_v12, %s3422_s25 }
0x16eb   :  { %483 = vrot.lane.b32.xlu0 %v3652_v56, %s3424_s30  ;;  %v3316_v56 = vpack.c.bf16 %v2505_v45, %v2504_v18 }
0x16ed   :  { %3317 = vmatprep.subr.bf16.mxu0 %v3316_v56 }
0x16ee   :  { %3319 = vmatpush3.bf16.msra.mxu0 %v3316_v56 }
0x16ef   :  { %1057 = vrot.lane.b32.xlu0 %v3754_v44, %s3424_s30  ;;  %v2506_v44 = vld [vmem:[%s4103_s4 + $0x10] sm:$0xff] }
0x16f3   :  { %1631 = vrot.lane.b32.xlu0 %v3856_v37, %s3424_s30  ;;  %v2507_v37 = vld [vmem:[%s4103_s4 + $0x18] sm:$0xff] }
0x16f4   :  { %v3320_v54 = vpack.c.bf16 %v2507_v37, %v2506_v44 }
0x16f6   :  { %3321 = vmatprep.subr.bf16.mxu0 %v3320_v54 }
0x16f7   :  { %2205 = vrot.lane.b32.xlu0 %v2203_v22, %s3424_s30  ;;  %3323 = vmatpush3.bf16.msra.mxu0 %v3320_v54 }
0x1759   :  { %v2479_v63 = vpop.permute.xlu0 %2478 }
0x175a   :  { %v2481_v52 = vadd.f32 %v2479_v63, %v2389_v42 }
0x175c   :  { %3398 = vtanh.f32 %v2481_v52 }
0x175d   :  { %v484_v53 = vpop.permute.xlu0 %483 }
0x175e   :  { %486 = vst.msk [vmem:[%s4104_s5] sm:$0xff] %vm58_vm0, %v484_v53 }
0x1761   :  { %v1058_v51 = vpop.permute.xlu0 %1057 }
0x1762   :  { %1060 = vst.msk [vmem:[%s4104_s5 + $0x10] sm:$0xff] %vm58_vm0, %v1058_v51 }
0x1765   :  { %v1632_v50 = vpop.permute.xlu0 %1631  ;;  %v2496_v13 = vld [vmem:[%s4104_s5] sm:$0xff] }
0x1766   :  { %v3399_v19 = vpop.eup %3398  ;;  %1634 = vst.msk [vmem:[%s4104_s5 + $0x20] sm:$0xff] %vm58_vm0, %v1632_v50  ;;  %3152 = vmatprep.mubr.msk.f32.mxu0 %vm58_vm0, %v2496_v13 }
0x1767   :  { %2485 = vrot.lane.b32.xlu1 %v3399_v19, %s3424_s30 }
0x1769   :  { %v2206_v57 = vpop.permute.xlu0 %2205  ;;  %v2498_v62 = vld [vmem:[%s4104_s5 + $0x10] sm:$0xff] }
0x176a   :  { %2208 = vst.msk [vmem:[%s4104_s5 + $0x30] sm:$0xff] %vm58_vm0, %v2206_v57 }
0x176b   :  { %770 = vrot.lane.b32.xlu1 %v3703_v49, %s3424_s30 }
0x176d   :  { %v2500_v1 = vld [vmem:[%s4104_s5 + $0x20] sm:$0xff] }
0x176f   :  { %1344 = vrot.lane.b32.xlu1 %v3805_v40, %s3424_s30 }
0x1771   :  { %v2502_v3 = vld [vmem:[%s4104_s5 + $0x30] sm:$0xff] }
0x1773   :  { %1918 = vrot.lane.b32.xlu1 %v3907_v34, %s3424_s30 }
0x17d9   :  { %v2486_v55 = vpop.permute.xlu1 %2485 }
0x17da   :  { %v2488_v60 = vmul.f32 %v2486_v55, %v2483_v11 }
0x17dc   :  { %v2490_v58 = vadd.f32 %v2489_v59, %v2488_v60 }
0x17dd   :  { %v771_v21 = vpop.permute.xlu1 %770 }
0x17de   :  { %773 = vst.msk [vmem:[%s4104_s5 + $0x8] sm:$0xff] %vm58_vm0, %v771_v21  ;;  %2492 = vrot.lane.b32.xlu1 %v2490_v58, %s3424_s30 }
0x17e1   :  { %v1345_v49 = vpop.permute.xlu1 %1344 }
0x17e2   :  { %1347 = vst.msk [vmem:[%s4104_s5 + $0x18] sm:$0xff] %vm58_vm0, %v1345_v49 }
0x17e5   :  { %v1919_v40 = vpop.permute.xlu1 %1918  ;;  %v2497_v34 = vld [vmem:[%s4104_s5 + $0x8] sm:$0xff] }
0x17e6   :  { %1921 = vst.msk [vmem:[%s4104_s5 + $0x28] sm:$0xff] %vm58_vm0, %v1919_v40  ;;  %3153 = vmatmul.mubr.msk.f32.vlgmr.msra.gmra.mrb[26].mxu0 %vm58_vm0, %v2497_v34 }
0x17e7   :  { %3155 = vmatprep.mubr.msk.f32.mxu0 %vm58_vm0, %v2498_v62 }
0x17e9   :  { %v2499_v0 = vld [vmem:[%s4104_s5 + $0x18] sm:$0xff] }
0x17ea   :  { %3156 = vmatmul.mubr.msk.f32.gmra.mrb[28].mxu0 %vm58_vm0, %v2499_v0 }
0x17eb   :  { %3158 = vmatprep.mubr.msk.f32.mxu0 %vm58_vm0, %v2500_v1 }
0x17ed   :  { %v2501_v2 = vld [vmem:[%s4104_s5 + $0x28] sm:$0xff] }
0x17ee   :  { %3159 = vmatmul.mubr.msk.f32.gmra.mrb[30].mxu0 %vm58_vm0, %v2501_v2 }
0x17ef   :  { %3161 = vmatprep.mubr.msk.f32.mxu0 %vm58_vm0, %v2502_v3 }
0x1850   :  { %v2493_v4 = vpop.permute.xlu1 %2492 }
0x1851   :  { %2495 = vst.msk [vmem:[%s4104_s5 + $0x38] sm:$0xff] %vm58_vm0, %v2493_v4 }
0x1858   :  { %v2503_v5 = vld [vmem:[%s4104_s5 + $0x38] sm:$0xff] }
0x1859   :  { %3162 = vmatmul.mubr.msk.f32.gmra.mrb[32].mxu0 %vm58_vm0, %v2503_v5 }
0x18b9   :  { %v3154_v7 = vpop.f32.mrb[26].mxu0 }
0x18ba   :  { %v2609_v8 = vadd.f32 %v3154_v7, %v2707_v6  ;;  %v2603_v9 = vpop.f32.mrb[27].mxu0 }
0x18bb   :  { %v2604_v10 = vadd.f32 %v2707_v6, %v2603_v9 }
0x18bc   :  { %3400 = vtanh.f32 %v2609_v8 }
0x18bd   :  { %3402 = vtanh.f32 %v2604_v10  ;;  %v3157_v14 = vpop.f32.mrb[28].mxu0 }
0x18be   :  { %v2619_v15 = vadd.f32 %v3157_v14, %v2707_v6  ;;  %v2613_v16 = vpop.f32.mrb[29].mxu0 }
0x18bf   :  { %v2614_v17 = vadd.f32 %v2707_v6, %v2613_v16 }
0x18c0   :  { %3404 = vtanh.f32 %v2619_v15 }
0x18c1   :  { %3406 = vtanh.f32 %v2614_v17  ;;  %v3160_v20 = vpop.f32.mrb[30].mxu0 }
0x18c2   :  { %v2629_v22 = vadd.f32 %v3160_v20, %v2707_v6  ;;  %v2623_v33 = vpop.f32.mrb[31].mxu0 }
0x18c3   :  { %v2624_v23 = vadd.f32 %v2707_v6, %v2623_v33 }
0x18c4   :  { %3408 = vtanh.f32 %v2629_v22 }
0x18c5   :  { %3410 = vtanh.f32 %v2624_v23 }
0x18c6   :  { %v3401_v24 = vpop.eup %3400 }
0x18c7   :  { %v3403_v25 = vpop.eup %3402  ;;  %2651 = vst.msk [vmem:[%s4104_s5 + $0x8] sm:$0xff] %vm58_vm0, %v3401_v24 }
0x18c8   :  { %2650 = vst.msk [vmem:[%s4104_s5] sm:$0xff] %vm58_vm0, %v3403_v25 }
0x18ca   :  { %v3405_v26 = vpop.eup %3404 }
0x18cb   :  { %v3407_v27 = vpop.eup %3406  ;;  %2653 = vst.msk [vmem:[%s4104_s5 + $0x18] sm:$0xff] %vm58_vm0, %v3405_v26 }
0x18cc   :  { %2652 = vst.msk [vmem:[%s4104_s5 + $0x10] sm:$0xff] %vm58_vm0, %v3407_v27 }
0x18ce   :  { %v3409_v28 = vpop.eup %3408 }
0x18cf   :  { %v3411_v29 = vpop.eup %3410  ;;  %2655 = vst.msk [vmem:[%s4104_s5 + $0x28] sm:$0xff] %vm58_vm0, %v3409_v28 }
0x18d0   :  { %2654 = vst.msk [vmem:[%s4104_s5 + $0x20] sm:$0xff] %vm58_vm0, %v3411_v29 }
0x192c   :  { %v3163_v30 = vpop.f32.mrb[32].mxu0 }
0x192d   :  { %v2639_v31 = vadd.f32 %v3163_v30, %v2707_v6  ;;  %v2633_v32 = vpop.f32.mrb[33].mxu0 }
0x192e   :  { %v2634_v35 = vadd.f32 %v2707_v6, %v2633_v32 }
0x192f   :  { %3412 = vtanh.f32 %v2639_v31 }
0x1930   :  { %3414 = vtanh.f32 %v2634_v35 }
0x1939   :  { %v3413_v36 = vpop.eup %3412 }
0x193a   :  { %v3415_v39 = vpop.eup %3414  ;;  %2657 = vst.msk [vmem:[%s4104_s5 + $0x38] sm:$0xff] %vm58_vm0, %v3413_v36 }
0x193b   :  { %2656 = vst.msk [vmem:[%s4104_s5 + $0x30] sm:$0xff] %vm58_vm0, %v3415_v39 }

</bundles_post_ra>
